<compile_context>
chip_gen: v7x
topology: tpu7x:2x2x1
jax: 0.10.0
libtpu: 0.0.40
codegen_flags: <defaults>
</compile_context>

<pallas_src>
import math

import jax
import jax.numpy as jnp
import numpy as np
from jax.experimental import pallas as pl
from jax.experimental.pallas import tpu as pltpu


_VMEM = pl.BlockSpec(memory_space=pltpu.MemorySpace.VMEM)


# ---------------------------------------------------------------------------
# Fused Pallas kernel (all GRU layers + fc in one call)
# ---------------------------------------------------------------------------
def make_fused_gru_kernel(num_layers, T, B, H, in_sizes):
    """Fused kernel for fixed (num_layers, T, B, H).

    Ref layout (positional):
      refs[0]              : x_flat  (T*B, I0)  time-major, flattened, f32
      refs[1 + l]          : pack_l  (I_l + H + 2, 3H) f32 packed per layer:
                               rows [0:I_l)        W_ih^T   (cols r|z|n)
                               rows [I_l:I_l+H)    W_hh^T   (cols r|z|n)
                               row   I_l+H         [b_ir+b_hr | b_iz+b_hz | b_in]
                               row   I_l+H+1       [0 | 0 | b_hn]
      refs[1 + num_layers] : fc_pack (H+1, O)  rows [0:H) = fc_w^T, row H = fc_b
      refs[2 + num_layers] : out     (B, O)
    """

    def kernel(*refs):
        x_ref = refs[0]
        layer_refs = refs[1:1 + num_layers]
        fc_ref = refs[1 + num_layers]
        out_ref = refs[2 + num_layers]

        cur = x_ref[...]                          # (T*B, I0) f32, current layer input
        h = jnp.zeros((B, H), jnp.float32)

        for l in range(num_layers):
            pk = layer_refs[l]
            isz = in_sizes[l]

            # --- static-offset slices out of the packed buffer (one-time,
            # off the recurrent path); weights cast to bf16 for the MXU ------
            wih_bf = pk[0:isz, :].astype(jnp.bfloat16)           # (I_l, 3H)
            whh_bf = pk[isz:isz + H, :].astype(jnp.bfloat16)     # (H, 3H)
            bi = pk[isz + H:isz + H + 1, :]                      # (1, 3H) f32
            b_hn = pk[isz + H + 1:isz + H + 2, 2 * H:3 * H]      # (1, H)  f32

            # --- hoisted fused input projection: ONE matmul over the whole
            # sequence, one bias row ------------------------------------------
            gi = jnp.dot(cur.astype(jnp.bfloat16), wih_bf,
                         preferred_element_type=jnp.float32) + bi   # (T*B, 3H)

            h = jnp.zeros((B, H), jnp.float32)
            last_layer = (l == num_layers - 1)
            hs = []

            # --- fully-unrolled recurrence: one fused (B,H)x(H,3H) matmul,
            # one fused r|z sigmoid, one tanh per step -------------------------
            for t in range(T):
                lo = t * B
                gh = jnp.dot(h.astype(jnp.bfloat16), whh_bf,
                             preferred_element_type=jnp.float32)     # (B, 3H)
                gi_t = gi[lo:lo + B, :]                              # (B, 3H)
                rz = jax.nn.sigmoid(gi_t[:, 0:2 * H] + gh[:, 0:2 * H])
                r = rz[:, 0:H]
                z = rz[:, H:2 * H]
                # b_hn added only to the n-gate slice, gated by r:
                n = jnp.tanh(gi_t[:, 2 * H:3 * H]
                             + r * (gh[:, 2 * H:3 * H] + b_hn))
                h = n + z * (h - n)            # == (1 - z) * n + z * h_prev
                if not last_layer:
                    hs.append(h)

            if not last_layer:
                # inter-layer sequence stays in vregs (no VMEM round-trip)
                cur = jnp.concatenate(hs, axis=0)          # (T*B, H) time-major

        # --- final Linear on the last timestep's hidden state -----------------
        fc_w_bf = fc_ref[0:H, :].astype(jnp.bfloat16)      # (H, O)
        fc_b = fc_ref[H:H + 1, :]                          # (1, O) f32
        out_ref[...] = (
            jnp.dot(h.astype(jnp.bfloat16), fc_w_bf,
                    preferred_element_type=jnp.float32) + fc_b
        )

    return kernel


# ---------------------------------------------------------------------------
# Parameter preparation (one-time): transpose, fold biases, pack per layer
# ---------------------------------------------------------------------------
def prepare_params(params):
    """PyTorch-layout params -> packed kernel-ready buffers (done once)."""
    layer_packs = []
    for layer in params["gru"]:
        w_ih, w_hh = layer["w_ih"], layer["w_hh"]          # (3H, I), (3H, H)
        b_ih, b_hh = layer["b_ih"], layer["b_hh"]          # (3H,)
        H = w_hh.shape[1]
        wih_t = w_ih.T                                     # (I, 3H), cols r|z|n
        whh_t = w_hh.T                                     # (H, 3H), cols r|z|n
        # folded bias row: [b_ir+b_hr | b_iz+b_hz | b_in]
        bi = jnp.concatenate([b_ih[:2 * H] + b_hh[:2 * H], b_ih[2 * H:]])
        # b_hn row, placed in the n-gate lane slot
        bhn_row = jnp.zeros((3 * H,), jnp.float32).at[2 * H:].set(b_hh[2 * H:])
        pack = jnp.concatenate(
            [wih_t, whh_t, bi.reshape(1, 3 * H), bhn_row.reshape(1, 3 * H)],
            axis=0)                                        # (I + H + 2, 3H)
        layer_packs.append(pack)
    fc_pack = jnp.concatenate(
        [params["fc_w"].T, params["fc_b"].reshape(1, -1)], axis=0)   # (H+1, O)
    return {"layer_packs": layer_packs, "fc_pack": fc_pack}


def simple_gru_forward(prepped, x):
    """x: (B, T, input_size) batch-first, like the PyTorch module."""
    B, T, I0 = x.shape
    layer_packs = prepped["layer_packs"]
    num_layers = len(layer_packs)
    H = layer_packs[0].shape[1] // 3
    O = prepped["fc_pack"].shape[1]
    in_sizes = tuple(int(p.shape[0]) - H - 2 for p in layer_packs)

    x_flat = jnp.transpose(x, (1, 0, 2)).reshape(T * B, I0)   # time-major, flat

    args = [x_flat] + list(layer_packs) + [prepped["fc_pack"]]
    kernel = make_fused_gru_kernel(num_layers, T, B, H, in_sizes)
    # TODO(synk): if T*B or H grows, chunk T with an "arbitrary" grid axis
    # carrying h and set vmem_limit_bytes (v7x has half the VMEM of v5e/v6e);
    # if OUT/B grow, make the fc output lane-dense (multiple of 128).
    return pl.pallas_call(
        kernel,
        out_shape=jax.ShapeDtypeStruct((B, O), jnp.float32),
        in_specs=[_VMEM] * len(args),
        out_specs=_VMEM,
    )(*args)


# ---------------------------------------------------------------------------
# Pure-JAX f32 reference (for correctness check)
# ---------------------------------------------------------------------------
def gru_layer_ref(x_tm, w_ih, w_hh, b_ih, b_hh):
    T, B, _ = x_tm.shape
    H = w_hh.shape[1]

    def step(h, x_t):
        gi = x_t @ w_ih.T + b_ih
        gh = h @ w_hh.T + b_hh
        r = jax.nn.sigmoid(gi[:, 0:H] + gh[:, 0:H])
        z = jax.nn.sigmoid(gi[:, H:2 * H] + gh[:, H:2 * H])
        n = jnp.tanh(gi[:, 2 * H:3 * H] + r * gh[:, 2 * H:3 * H])
        h_new = (1.0 - z) * n + z * h
        return h_new, h_new

    _, seq = jax.lax.scan(step, jnp.zeros((B, H), jnp.float32), x_tm)
    return seq


def simple_gru_ref(params, x):
    x_tm = jnp.transpose(x, (1, 0, 2))
    for layer in params["gru"]:
        x_tm = gru_layer_ref(x_tm, layer["w_ih"], layer["w_hh"],
                             layer["b_ih"], layer["b_hh"])
    return x_tm[-1] @ params["fc_w"].T + params["fc_b"]


# ---------------------------------------------------------------------------
# Deterministic parameter init (PyTorch-style uniform(-1/sqrt(H), 1/sqrt(H)))
# ---------------------------------------------------------------------------
def init_params(key, input_size, hidden_size, out_size, num_layers):
    k = 1.0 / math.sqrt(hidden_size)
    layers = []
    for l in range(num_layers):
        in_sz = input_size if l == 0 else hidden_size
        key, k1, k2, k3, k4 = jax.random.split(key, 5)
        layers.append({
            "w_ih": jax.random.uniform(k1, (3 * hidden_size, in_sz),
                                       jnp.float32, -k, k),
            "w_hh": jax.random.uniform(k2, (3 * hidden_size, hidden_size),
                                       jnp.float32, -k, k),
            "b_ih": jax.random.uniform(k3, (3 * hidden_size,),
                                       jnp.float32, -k, k),
            "b_hh": jax.random.uniform(k4, (3 * hidden_size,),
                                       jnp.float32, -k, k),
        })
    key, k5, k6 = jax.random.split(key, 3)
    return {
        "gru": layers,
        "fc_w": jax.random.uniform(k5, (out_size, hidden_size),
                                   jnp.float32, -k, k),
        "fc_b": jax.random.uniform(k6, (out_size,), jnp.float32, -k, k),
    }


# ---------------------------------------------------------------------------
if __name__ == "__main__":
    # SimpleGRU(input_size=16, hidden_size=32, out_size=4, num_layers=2)
    B, T = 2, 8
    INPUT, HIDDEN, OUT, LAYERS = 16, 32, 4, 2

    root = jax.random.PRNGKey(0)
    pkey, xkey = jax.random.split(root)
    params = init_params(pkey, INPUT, HIDDEN, OUT, LAYERS)
    x = jax.random.normal(xkey, (B, T, INPUT), jnp.float32)

    prepped = prepare_params(params)        # one-time transpose/fold/pack
    out = jax.block_until_ready(simple_gru_forward(prepped, x))

    ref = jax.block_until_ready(simple_gru_ref(params, x))
    # bf16 matmul operands (f32 accumulation) -> tolerance relaxed to 2e-2
    np.testing.assert_allclose(np.asarray(out), np.asarray(ref),
                               rtol=2e-2, atol=2e-2)
    assert out.shape == (B, OUT)
    print("KERNEL_OK")
</pallas_src>

<mosaic_0001>
module attributes {stable_mosaic.version = 11 : i64} {
  func.func @kernel(%arg0: memref<16x16xf32, #tpu.memory_space<vmem>>, %arg1: memref<50x96xf32, #tpu.memory_space<vmem>>, %arg2: memref<66x96xf32, #tpu.memory_space<vmem>>, %arg3: memref<33x4xf32, #tpu.memory_space<vmem>>, %arg4: memref<2x4xf32, #tpu.memory_space<vmem>>) attributes {dimension_semantics = [], scalar_prefetch = 0 : i64, scratch_operands = 0 : i64, tpu.core_type = #tpu.core_type<tc>} {
    %c0 = arith.constant 0 : index
    %c0_0 = arith.constant 0 : index
    %0 = vector.load %arg0[%c0, %c0_0] : memref<16x16xf32, #tpu.memory_space<vmem>>, vector<16x16xf32>
    %c0_1 = arith.constant 0 : index
    %c0_2 = arith.constant 0 : index
    %1 = vector.load %arg1[%c0_1, %c0_2] : memref<50x96xf32, #tpu.memory_space<vmem>>, vector<16x96xf32>
    %2 = arith.truncf %1 : vector<16x96xf32> to vector<16x96xbf16>
    %c16 = arith.constant 16 : index
    %c0_3 = arith.constant 0 : index
    %3 = vector.load %arg1[%c16, %c0_3] : memref<50x96xf32, #tpu.memory_space<vmem>>, vector<32x96xf32>
    %4 = arith.truncf %3 : vector<32x96xf32> to vector<32x96xbf16>
    %c48 = arith.constant 48 : index
    %c0_4 = arith.constant 0 : index
    %5 = vector.load %arg1[%c48, %c0_4] : memref<50x96xf32, #tpu.memory_space<vmem>>, vector<1x96xf32>
    %c49 = arith.constant 49 : index
    %c64 = arith.constant 64 : index
    %6 = vector.load %arg1[%c49, %c64] : memref<50x96xf32, #tpu.memory_space<vmem>>, vector<1x32xf32>
    %7 = arith.truncf %0 : vector<16x16xf32> to vector<16x16xbf16>
    %cst = arith.constant dense<0.000000e+00> : vector<16x96xf32>
    %8 = tpu.matmul %7, %2, %cst {dimension_numbers = #tpu.dot_dimension_numbers<[1], [0], [0], [1], [0, 0, 1, 1], [], []>} : vector<16x16xbf16>, vector<16x96xbf16>, vector<16x96xf32> -> vector<16x96xf32>
    %9 = vector.broadcast %5 : vector<1x96xf32> to vector<16x96xf32>
    %10 = arith.addf %8, %9 : vector<16x96xf32>
    %cst_5 = arith.constant 0.000000e+00 : f32
    %11 = vector.broadcast %cst_5 : f32 to vector<2x32xf32>
    %12 = arith.truncf %11 : vector<2x32xf32> to vector<2x32xbf16>
    %cst_6 = arith.constant dense<0.000000e+00> : vector<2x96xf32>
    %13 = tpu.matmul %12, %4, %cst_6 {dimension_numbers = #tpu.dot_dimension_numbers<[1], [0], [0], [1], [0, 0, 1, 1], [], []>} : vector<2x32xbf16>, vector<32x96xbf16>, vector<2x96xf32> -> vector<2x96xf32>
    %14 = vector.extract_strided_slice %10 {offsets = [0, 0], sizes = [2, 96], strides = [1, 1]} : vector<16x96xf32> to vector<2x96xf32>
    %15 = vector.extract_strided_slice %14 {offsets = [0, 0], sizes = [2, 64], strides = [1, 1]} : vector<2x96xf32> to vector<2x64xf32>
    %16 = vector.extract_strided_slice %13 {offsets = [0, 0], sizes = [2, 64], strides = [1, 1]} : vector<2x96xf32> to vector<2x64xf32>
    %17 = arith.addf %15, %16 : vector<2x64xf32>
    %18 = arith.negf %17 : vector<2x64xf32>
    %19 = math.exp %18 : vector<2x64xf32>
    %cst_7 = arith.constant 1.000000e+00 : f32
    %20 = vector.broadcast %cst_7 : f32 to vector<2x64xf32>
    %21 = arith.addf %20, %19 : vector<2x64xf32>
    %22 = arith.divf %20, %21 : vector<2x64xf32>
    %23 = vector.extract_strided_slice %22 {offsets = [0, 0], sizes = [2, 32], strides = [1, 1]} : vector<2x64xf32> to vector<2x32xf32>
    %24 = vector.extract_strided_slice %22 {offsets = [0, 32], sizes = [2, 32], strides = [1, 1]} : vector<2x64xf32> to vector<2x32xf32>
    %25 = vector.extract_strided_slice %14 {offsets = [0, 64], sizes = [2, 32], strides = [1, 1]} : vector<2x96xf32> to vector<2x32xf32>
    %26 = vector.extract_strided_slice %13 {offsets = [0, 64], sizes = [2, 32], strides = [1, 1]} : vector<2x96xf32> to vector<2x32xf32>
    %27 = vector.broadcast %6 : vector<1x32xf32> to vector<2x32xf32>
    %28 = arith.addf %26, %27 : vector<2x32xf32>
    %29 = arith.mulf %23, %28 : vector<2x32xf32>
    %30 = arith.addf %25, %29 : vector<2x32xf32>
    %31 = math.tanh %30 : vector<2x32xf32>
    %32 = arith.subf %11, %31 : vector<2x32xf32>
    %33 = arith.mulf %24, %32 : vector<2x32xf32>
    %34 = arith.addf %31, %33 : vector<2x32xf32>
    %35 = arith.truncf %34 : vector<2x32xf32> to vector<2x32xbf16>
    %cst_8 = arith.constant dense<0.000000e+00> : vector<2x96xf32>
    %36 = tpu.matmul %35, %4, %cst_8 {dimension_numbers = #tpu.dot_dimension_numbers<[1], [0], [0], [1], [0, 0, 1, 1], [], []>} : vector<2x32xbf16>, vector<32x96xbf16>, vector<2x96xf32> -> vector<2x96xf32>
    %37 = vector.extract_strided_slice %10 {offsets = [2, 0], sizes = [2, 96], strides = [1, 1]} : vector<16x96xf32> to vector<2x96xf32>
    %38 = vector.extract_strided_slice %37 {offsets = [0, 0], sizes = [2, 64], strides = [1, 1]} : vector<2x96xf32> to vector<2x64xf32>
    %39 = vector.extract_strided_slice %36 {offsets = [0, 0], sizes = [2, 64], strides = [1, 1]} : vector<2x96xf32> to vector<2x64xf32>
    %40 = arith.addf %38, %39 : vector<2x64xf32>
    %41 = arith.negf %40 : vector<2x64xf32>
    %42 = math.exp %41 : vector<2x64xf32>
    %cst_9 = arith.constant 1.000000e+00 : f32
    %43 = vector.broadcast %cst_9 : f32 to vector<2x64xf32>
    %44 = arith.addf %43, %42 : vector<2x64xf32>
    %45 = arith.divf %43, %44 : vector<2x64xf32>
    %46 = vector.extract_strided_slice %45 {offsets = [0, 0], sizes = [2, 32], strides = [1, 1]} : vector<2x64xf32> to vector<2x32xf32>
    %47 = vector.extract_strided_slice %45 {offsets = [0, 32], sizes = [2, 32], strides = [1, 1]} : vector<2x64xf32> to vector<2x32xf32>
    %48 = vector.extract_strided_slice %37 {offsets = [0, 64], sizes = [2, 32], strides = [1, 1]} : vector<2x96xf32> to vector<2x32xf32>
    %49 = vector.extract_strided_slice %36 {offsets = [0, 64], sizes = [2, 32], strides = [1, 1]} : vector<2x96xf32> to vector<2x32xf32>
    %50 = vector.broadcast %6 : vector<1x32xf32> to vector<2x32xf32>
    %51 = arith.addf %49, %50 : vector<2x32xf32>
    %52 = arith.mulf %46, %51 : vector<2x32xf32>
    %53 = arith.addf %48, %52 : vector<2x32xf32>
    %54 = math.tanh %53 : vector<2x32xf32>
    %55 = arith.subf %34, %54 : vector<2x32xf32>
    %56 = arith.mulf %47, %55 : vector<2x32xf32>
    %57 = arith.addf %54, %56 : vector<2x32xf32>
    %58 = arith.truncf %57 : vector<2x32xf32> to vector<2x32xbf16>
    %cst_10 = arith.constant dense<0.000000e+00> : vector<2x96xf32>
    %59 = tpu.matmul %58, %4, %cst_10 {dimension_numbers = #tpu.dot_dimension_numbers<[1], [0], [0], [1], [0, 0, 1, 1], [], []>} : vector<2x32xbf16>, vector<32x96xbf16>, vector<2x96xf32> -> vector<2x96xf32>
    %60 = vector.extract_strided_slice %10 {offsets = [4, 0], sizes = [2, 96], strides = [1, 1]} : vector<16x96xf32> to vector<2x96xf32>
    %61 = vector.extract_strided_slice %60 {offsets = [0, 0], sizes = [2, 64], strides = [1, 1]} : vector<2x96xf32> to vector<2x64xf32>
    %62 = vector.extract_strided_slice %59 {offsets = [0, 0], sizes = [2, 64], strides = [1, 1]} : vector<2x96xf32> to vector<2x64xf32>
    %63 = arith.addf %61, %62 : vector<2x64xf32>
    %64 = arith.negf %63 : vector<2x64xf32>
    %65 = math.exp %64 : vector<2x64xf32>
    %cst_11 = arith.constant 1.000000e+00 : f32
    %66 = vector.broadcast %cst_11 : f32 to vector<2x64xf32>
    %67 = arith.addf %66, %65 : vector<2x64xf32>
    %68 = arith.divf %66, %67 : vector<2x64xf32>
    %69 = vector.extract_strided_slice %68 {offsets = [0, 0], sizes = [2, 32], strides = [1, 1]} : vector<2x64xf32> to vector<2x32xf32>
    %70 = vector.extract_strided_slice %68 {offsets = [0, 32], sizes = [2, 32], strides = [1, 1]} : vector<2x64xf32> to vector<2x32xf32>
    %71 = vector.extract_strided_slice %60 {offsets = [0, 64], sizes = [2, 32], strides = [1, 1]} : vector<2x96xf32> to vector<2x32xf32>
    %72 = vector.extract_strided_slice %59 {offsets = [0, 64], sizes = [2, 32], strides = [1, 1]} : vector<2x96xf32> to vector<2x32xf32>
    %73 = vector.broadcast %6 : vector<1x32xf32> to vector<2x32xf32>
    %74 = arith.addf %72, %73 : vector<2x32xf32>
    %75 = arith.mulf %69, %74 : vector<2x32xf32>
    %76 = arith.addf %71, %75 : vector<2x32xf32>
    %77 = math.tanh %76 : vector<2x32xf32>
    %78 = arith.subf %57, %77 : vector<2x32xf32>
    %79 = arith.mulf %70, %78 : vector<2x32xf32>
    %80 = arith.addf %77, %79 : vector<2x32xf32>
    %81 = arith.truncf %80 : vector<2x32xf32> to vector<2x32xbf16>
    %cst_12 = arith.constant dense<0.000000e+00> : vector<2x96xf32>
    %82 = tpu.matmul %81, %4, %cst_12 {dimension_numbers = #tpu.dot_dimension_numbers<[1], [0], [0], [1], [0, 0, 1, 1], [], []>} : vector<2x32xbf16>, vector<32x96xbf16>, vector<2x96xf32> -> vector<2x96xf32>
    %83 = vector.extract_strided_slice %10 {offsets = [6, 0], sizes = [2, 96], strides = [1, 1]} : vector<16x96xf32> to vector<2x96xf32>
    %84 = vector.extract_strided_slice %83 {offsets = [0, 0], sizes = [2, 64], strides = [1, 1]} : vector<2x96xf32> to vector<2x64xf32>
    %85 = vector.extract_strided_slice %82 {offsets = [0, 0], sizes = [2, 64], strides = [1, 1]} : vector<2x96xf32> to vector<2x64xf32>
    %86 = arith.addf %84, %85 : vector<2x64xf32>
    %87 = arith.negf %86 : vector<2x64xf32>
    %88 = math.exp %87 : vector<2x64xf32>
    %cst_13 = arith.constant 1.000000e+00 : f32
    %89 = vector.broadcast %cst_13 : f32 to vector<2x64xf32>
    %90 = arith.addf %89, %88 : vector<2x64xf32>
    %91 = arith.divf %89, %90 : vector<2x64xf32>
    %92 = vector.extract_strided_slice %91 {offsets = [0, 0], sizes = [2, 32], strides = [1, 1]} : vector<2x64xf32> to vector<2x32xf32>
    %93 = vector.extract_strided_slice %91 {offsets = [0, 32], sizes = [2, 32], strides = [1, 1]} : vector<2x64xf32> to vector<2x32xf32>
    %94 = vector.extract_strided_slice %83 {offsets = [0, 64], sizes = [2, 32], strides = [1, 1]} : vector<2x96xf32> to vector<2x32xf32>
    %95 = vector.extract_strided_slice %82 {offsets = [0, 64], sizes = [2, 32], strides = [1, 1]} : vector<2x96xf32> to vector<2x32xf32>
    %96 = vector.broadcast %6 : vector<1x32xf32> to vector<2x32xf32>
    %97 = arith.addf %95, %96 : vector<2x32xf32>
    %98 = arith.mulf %92, %97 : vector<2x32xf32>
    %99 = arith.addf %94, %98 : vector<2x32xf32>
    %100 = math.tanh %99 : vector<2x32xf32>
    %101 = arith.subf %80, %100 : vector<2x32xf32>
    %102 = arith.mulf %93, %101 : vector<2x32xf32>
    %103 = arith.addf %100, %102 : vector<2x32xf32>
    %104 = arith.truncf %103 : vector<2x32xf32> to vector<2x32xbf16>
    %cst_14 = arith.constant dense<0.000000e+00> : vector<2x96xf32>
    %105 = tpu.matmul %104, %4, %cst_14 {dimension_numbers = #tpu.dot_dimension_numbers<[1], [0], [0], [1], [0, 0, 1, 1], [], []>} : vector<2x32xbf16>, vector<32x96xbf16>, vector<2x96xf32> -> vector<2x96xf32>
    %106 = vector.extract_strided_slice %10 {offsets = [8, 0], sizes = [2, 96], strides = [1, 1]} : vector<16x96xf32> to vector<2x96xf32>
    %107 = vector.extract_strided_slice %106 {offsets = [0, 0], sizes = [2, 64], strides = [1, 1]} : vector<2x96xf32> to vector<2x64xf32>
    %108 = vector.extract_strided_slice %105 {offsets = [0, 0], sizes = [2, 64], strides = [1, 1]} : vector<2x96xf32> to vector<2x64xf32>
    %109 = arith.addf %107, %108 : vector<2x64xf32>
    %110 = arith.negf %109 : vector<2x64xf32>
    %111 = math.exp %110 : vector<2x64xf32>
    %cst_15 = arith.constant 1.000000e+00 : f32
    %112 = vector.broadcast %cst_15 : f32 to vector<2x64xf32>
    %113 = arith.addf %112, %111 : vector<2x64xf32>
    %114 = arith.divf %112, %113 : vector<2x64xf32>
    %115 = vector.extract_strided_slice %114 {offsets = [0, 0], sizes = [2, 32], strides = [1, 1]} : vector<2x64xf32> to vector<2x32xf32>
    %116 = vector.extract_strided_slice %114 {offsets = [0, 32], sizes = [2, 32], strides = [1, 1]} : vector<2x64xf32> to vector<2x32xf32>
    %117 = vector.extract_strided_slice %106 {offsets = [0, 64], sizes = [2, 32], strides = [1, 1]} : vector<2x96xf32> to vector<2x32xf32>
    %118 = vector.extract_strided_slice %105 {offsets = [0, 64], sizes = [2, 32], strides = [1, 1]} : vector<2x96xf32> to vector<2x32xf32>
    %119 = vector.broadcast %6 : vector<1x32xf32> to vector<2x32xf32>
    %120 = arith.addf %118, %119 : vector<2x32xf32>
    %121 = arith.mulf %115, %120 : vector<2x32xf32>
    %122 = arith.addf %117, %121 : vector<2x32xf32>
    %123 = math.tanh %122 : vector<2x32xf32>
    %124 = arith.subf %103, %123 : vector<2x32xf32>
    %125 = arith.mulf %116, %124 : vector<2x32xf32>
    %126 = arith.addf %123, %125 : vector<2x32xf32>
    %127 = arith.truncf %126 : vector<2x32xf32> to vector<2x32xbf16>
    %cst_16 = arith.constant dense<0.000000e+00> : vector<2x96xf32>
    %128 = tpu.matmul %127, %4, %cst_16 {dimension_numbers = #tpu.dot_dimension_numbers<[1], [0], [0], [1], [0, 0, 1, 1], [], []>} : vector<2x32xbf16>, vector<32x96xbf16>, vector<2x96xf32> -> vector<2x96xf32>
    %129 = vector.extract_strided_slice %10 {offsets = [10, 0], sizes = [2, 96], strides = [1, 1]} : vector<16x96xf32> to vector<2x96xf32>
    %130 = vector.extract_strided_slice %129 {offsets = [0, 0], sizes = [2, 64], strides = [1, 1]} : vector<2x96xf32> to vector<2x64xf32>
    %131 = vector.extract_strided_slice %128 {offsets = [0, 0], sizes = [2, 64], strides = [1, 1]} : vector<2x96xf32> to vector<2x64xf32>
    %132 = arith.addf %130, %131 : vector<2x64xf32>
    %133 = arith.negf %132 : vector<2x64xf32>
    %134 = math.exp %133 : vector<2x64xf32>
    %cst_17 = arith.constant 1.000000e+00 : f32
    %135 = vector.broadcast %cst_17 : f32 to vector<2x64xf32>
    %136 = arith.addf %135, %134 : vector<2x64xf32>
    %137 = arith.divf %135, %136 : vector<2x64xf32>
    %138 = vector.extract_strided_slice %137 {offsets = [0, 0], sizes = [2, 32], strides = [1, 1]} : vector<2x64xf32> to vector<2x32xf32>
    %139 = vector.extract_strided_slice %137 {offsets = [0, 32], sizes = [2, 32], strides = [1, 1]} : vector<2x64xf32> to vector<2x32xf32>
    %140 = vector.extract_strided_slice %129 {offsets = [0, 64], sizes = [2, 32], strides = [1, 1]} : vector<2x96xf32> to vector<2x32xf32>
    %141 = vector.extract_strided_slice %128 {offsets = [0, 64], sizes = [2, 32], strides = [1, 1]} : vector<2x96xf32> to vector<2x32xf32>
    %142 = vector.broadcast %6 : vector<1x32xf32> to vector<2x32xf32>
    %143 = arith.addf %141, %142 : vector<2x32xf32>
    %144 = arith.mulf %138, %143 : vector<2x32xf32>
    %145 = arith.addf %140, %144 : vector<2x32xf32>
    %146 = math.tanh %145 : vector<2x32xf32>
    %147 = arith.subf %126, %146 : vector<2x32xf32>
    %148 = arith.mulf %139, %147 : vector<2x32xf32>
    %149 = arith.addf %146, %148 : vector<2x32xf32>
    %150 = arith.truncf %149 : vector<2x32xf32> to vector<2x32xbf16>
    %cst_18 = arith.constant dense<0.000000e+00> : vector<2x96xf32>
    %151 = tpu.matmul %150, %4, %cst_18 {dimension_numbers = #tpu.dot_dimension_numbers<[1], [0], [0], [1], [0, 0, 1, 1], [], []>} : vector<2x32xbf16>, vector<32x96xbf16>, vector<2x96xf32> -> vector<2x96xf32>
    %152 = vector.extract_strided_slice %10 {offsets = [12, 0], sizes = [2, 96], strides = [1, 1]} : vector<16x96xf32> to vector<2x96xf32>
    %153 = vector.extract_strided_slice %152 {offsets = [0, 0], sizes = [2, 64], strides = [1, 1]} : vector<2x96xf32> to vector<2x64xf32>
    %154 = vector.extract_strided_slice %151 {offsets = [0, 0], sizes = [2, 64], strides = [1, 1]} : vector<2x96xf32> to vector<2x64xf32>
    %155 = arith.addf %153, %154 : vector<2x64xf32>
    %156 = arith.negf %155 : vector<2x64xf32>
    %157 = math.exp %156 : vector<2x64xf32>
    %cst_19 = arith.constant 1.000000e+00 : f32
    %158 = vector.broadcast %cst_19 : f32 to vector<2x64xf32>
    %159 = arith.addf %158, %157 : vector<2x64xf32>
    %160 = arith.divf %158, %159 : vector<2x64xf32>
    %161 = vector.extract_strided_slice %160 {offsets = [0, 0], sizes = [2, 32], strides = [1, 1]} : vector<2x64xf32> to vector<2x32xf32>
    %162 = vector.extract_strided_slice %160 {offsets = [0, 32], sizes = [2, 32], strides = [1, 1]} : vector<2x64xf32> to vector<2x32xf32>
    %163 = vector.extract_strided_slice %152 {offsets = [0, 64], sizes = [2, 32], strides = [1, 1]} : vector<2x96xf32> to vector<2x32xf32>
    %164 = vector.extract_strided_slice %151 {offsets = [0, 64], sizes = [2, 32], strides = [1, 1]} : vector<2x96xf32> to vector<2x32xf32>
    %165 = vector.broadcast %6 : vector<1x32xf32> to vector<2x32xf32>
    %166 = arith.addf %164, %165 : vector<2x32xf32>
    %167 = arith.mulf %161, %166 : vector<2x32xf32>
    %168 = arith.addf %163, %167 : vector<2x32xf32>
    %169 = math.tanh %168 : vector<2x32xf32>
    %170 = arith.subf %149, %169 : vector<2x32xf32>
    %171 = arith.mulf %162, %170 : vector<2x32xf32>
    %172 = arith.addf %169, %171 : vector<2x32xf32>
    %173 = arith.truncf %172 : vector<2x32xf32> to vector<2x32xbf16>
    %cst_20 = arith.constant dense<0.000000e+00> : vector<2x96xf32>
    %174 = tpu.matmul %173, %4, %cst_20 {dimension_numbers = #tpu.dot_dimension_numbers<[1], [0], [0], [1], [0, 0, 1, 1], [], []>} : vector<2x32xbf16>, vector<32x96xbf16>, vector<2x96xf32> -> vector<2x96xf32>
    %175 = vector.extract_strided_slice %10 {offsets = [14, 0], sizes = [2, 96], strides = [1, 1]} : vector<16x96xf32> to vector<2x96xf32>
    %176 = vector.extract_strided_slice %175 {offsets = [0, 0], sizes = [2, 64], strides = [1, 1]} : vector<2x96xf32> to vector<2x64xf32>
    %177 = vector.extract_strided_slice %174 {offsets = [0, 0], sizes = [2, 64], strides = [1, 1]} : vector<2x96xf32> to vector<2x64xf32>
    %178 = arith.addf %176, %177 : vector<2x64xf32>
    %179 = arith.negf %178 : vector<2x64xf32>
    %180 = math.exp %179 : vector<2x64xf32>
    %cst_21 = arith.constant 1.000000e+00 : f32
    %181 = vector.broadcast %cst_21 : f32 to vector<2x64xf32>
    %182 = arith.addf %181, %180 : vector<2x64xf32>
    %183 = arith.divf %181, %182 : vector<2x64xf32>
    %184 = vector.extract_strided_slice %183 {offsets = [0, 0], sizes = [2, 32], strides = [1, 1]} : vector<2x64xf32> to vector<2x32xf32>
    %185 = vector.extract_strided_slice %183 {offsets = [0, 32], sizes = [2, 32], strides = [1, 1]} : vector<2x64xf32> to vector<2x32xf32>
    %186 = vector.extract_strided_slice %175 {offsets = [0, 64], sizes = [2, 32], strides = [1, 1]} : vector<2x96xf32> to vector<2x32xf32>
    %187 = vector.extract_strided_slice %174 {offsets = [0, 64], sizes = [2, 32], strides = [1, 1]} : vector<2x96xf32> to vector<2x32xf32>
    %188 = vector.broadcast %6 : vector<1x32xf32> to vector<2x32xf32>
    %189 = arith.addf %187, %188 : vector<2x32xf32>
    %190 = arith.mulf %184, %189 : vector<2x32xf32>
    %191 = arith.addf %186, %190 : vector<2x32xf32>
    %192 = math.tanh %191 : vector<2x32xf32>
    %193 = arith.subf %172, %192 : vector<2x32xf32>
    %194 = arith.mulf %185, %193 : vector<2x32xf32>
    %195 = arith.addf %192, %194 : vector<2x32xf32>
    %196 = tpu.concatenate %34, %57, %80, %103, %126, %149, %172, %195 in 0 : vector<2x32xf32>, vector<2x32xf32>, vector<2x32xf32>, vector<2x32xf32>, vector<2x32xf32>, vector<2x32xf32>, vector<2x32xf32>, vector<2x32xf32> -> vector<16x32xf32>
    %c0_22 = arith.constant 0 : index
    %c0_23 = arith.constant 0 : index
    %197 = vector.load %arg2[%c0_22, %c0_23] : memref<66x96xf32, #tpu.memory_space<vmem>>, vector<32x96xf32>
    %198 = arith.truncf %197 : vector<32x96xf32> to vector<32x96xbf16>
    %c32 = arith.constant 32 : index
    %c0_24 = arith.constant 0 : index
    %199 = vector.load %arg2[%c32, %c0_24] : memref<66x96xf32, #tpu.memory_space<vmem>>, vector<32x96xf32>
    %200 = arith.truncf %199 : vector<32x96xf32> to vector<32x96xbf16>
    %c64_25 = arith.constant 64 : index
    %c0_26 = arith.constant 0 : index
    %201 = vector.load %arg2[%c64_25, %c0_26] : memref<66x96xf32, #tpu.memory_space<vmem>>, vector<1x96xf32>
    %c65 = arith.constant 65 : index
    %c64_27 = arith.constant 64 : index
    %202 = vector.load %arg2[%c65, %c64_27] : memref<66x96xf32, #tpu.memory_space<vmem>>, vector<1x32xf32>
    %203 = arith.truncf %196 : vector<16x32xf32> to vector<16x32xbf16>
    %cst_28 = arith.constant dense<0.000000e+00> : vector<16x96xf32>
    %204 = tpu.matmul %203, %198, %cst_28 {dimension_numbers = #tpu.dot_dimension_numbers<[1], [0], [0], [1], [0, 0, 1, 1], [], []>} : vector<16x32xbf16>, vector<32x96xbf16>, vector<16x96xf32> -> vector<16x96xf32>
    %205 = vector.broadcast %201 : vector<1x96xf32> to vector<16x96xf32>
    %206 = arith.addf %204, %205 : vector<16x96xf32>
    %cst_29 = arith.constant 0.000000e+00 : f32
    %207 = vector.broadcast %cst_29 : f32 to vector<2x32xf32>
    %208 = arith.truncf %207 : vector<2x32xf32> to vector<2x32xbf16>
    %cst_30 = arith.constant dense<0.000000e+00> : vector<2x96xf32>
    %209 = tpu.matmul %208, %200, %cst_30 {dimension_numbers = #tpu.dot_dimension_numbers<[1], [0], [0], [1], [0, 0, 1, 1], [], []>} : vector<2x32xbf16>, vector<32x96xbf16>, vector<2x96xf32> -> vector<2x96xf32>
    %210 = vector.extract_strided_slice %206 {offsets = [0, 0], sizes = [2, 96], strides = [1, 1]} : vector<16x96xf32> to vector<2x96xf32>
    %211 = vector.extract_strided_slice %210 {offsets = [0, 0], sizes = [2, 64], strides = [1, 1]} : vector<2x96xf32> to vector<2x64xf32>
    %212 = vector.extract_strided_slice %209 {offsets = [0, 0], sizes = [2, 64], strides = [1, 1]} : vector<2x96xf32> to vector<2x64xf32>
    %213 = arith.addf %211, %212 : vector<2x64xf32>
    %214 = arith.negf %213 : vector<2x64xf32>
    %215 = math.exp %214 : vector<2x64xf32>
    %cst_31 = arith.constant 1.000000e+00 : f32
    %216 = vector.broadcast %cst_31 : f32 to vector<2x64xf32>
    %217 = arith.addf %216, %215 : vector<2x64xf32>
    %218 = arith.divf %216, %217 : vector<2x64xf32>
    %219 = vector.extract_strided_slice %218 {offsets = [0, 0], sizes = [2, 32], strides = [1, 1]} : vector<2x64xf32> to vector<2x32xf32>
    %220 = vector.extract_strided_slice %218 {offsets = [0, 32], sizes = [2, 32], strides = [1, 1]} : vector<2x64xf32> to vector<2x32xf32>
    %221 = vector.extract_strided_slice %210 {offsets = [0, 64], sizes = [2, 32], strides = [1, 1]} : vector<2x96xf32> to vector<2x32xf32>
    %222 = vector.extract_strided_slice %209 {offsets = [0, 64], sizes = [2, 32], strides = [1, 1]} : vector<2x96xf32> to vector<2x32xf32>
    %223 = vector.broadcast %202 : vector<1x32xf32> to vector<2x32xf32>
    %224 = arith.addf %222, %223 : vector<2x32xf32>
    %225 = arith.mulf %219, %224 : vector<2x32xf32>
    %226 = arith.addf %221, %225 : vector<2x32xf32>
    %227 = math.tanh %226 : vector<2x32xf32>
    %228 = arith.subf %207, %227 : vector<2x32xf32>
    %229 = arith.mulf %220, %228 : vector<2x32xf32>
    %230 = arith.addf %227, %229 : vector<2x32xf32>
    %231 = arith.truncf %230 : vector<2x32xf32> to vector<2x32xbf16>
    %cst_32 = arith.constant dense<0.000000e+00> : vector<2x96xf32>
    %232 = tpu.matmul %231, %200, %cst_32 {dimension_numbers = #tpu.dot_dimension_numbers<[1], [0], [0], [1], [0, 0, 1, 1], [], []>} : vector<2x32xbf16>, vector<32x96xbf16>, vector<2x96xf32> -> vector<2x96xf32>
    %233 = vector.extract_strided_slice %206 {offsets = [2, 0], sizes = [2, 96], strides = [1, 1]} : vector<16x96xf32> to vector<2x96xf32>
    %234 = vector.extract_strided_slice %233 {offsets = [0, 0], sizes = [2, 64], strides = [1, 1]} : vector<2x96xf32> to vector<2x64xf32>
    %235 = vector.extract_strided_slice %232 {offsets = [0, 0], sizes = [2, 64], strides = [1, 1]} : vector<2x96xf32> to vector<2x64xf32>
    %236 = arith.addf %234, %235 : vector<2x64xf32>
    %237 = arith.negf %236 : vector<2x64xf32>
    %238 = math.exp %237 : vector<2x64xf32>
    %cst_33 = arith.constant 1.000000e+00 : f32
    %239 = vector.broadcast %cst_33 : f32 to vector<2x64xf32>
    %240 = arith.addf %239, %238 : vector<2x64xf32>
    %241 = arith.divf %239, %240 : vector<2x64xf32>
    %242 = vector.extract_strided_slice %241 {offsets = [0, 0], sizes = [2, 32], strides = [1, 1]} : vector<2x64xf32> to vector<2x32xf32>
    %243 = vector.extract_strided_slice %241 {offsets = [0, 32], sizes = [2, 32], strides = [1, 1]} : vector<2x64xf32> to vector<2x32xf32>
    %244 = vector.extract_strided_slice %233 {offsets = [0, 64], sizes = [2, 32], strides = [1, 1]} : vector<2x96xf32> to vector<2x32xf32>
    %245 = vector.extract_strided_slice %232 {offsets = [0, 64], sizes = [2, 32], strides = [1, 1]} : vector<2x96xf32> to vector<2x32xf32>
    %246 = vector.broadcast %202 : vector<1x32xf32> to vector<2x32xf32>
    %247 = arith.addf %245, %246 : vector<2x32xf32>
    %248 = arith.mulf %242, %247 : vector<2x32xf32>
    %249 = arith.addf %244, %248 : vector<2x32xf32>
    %250 = math.tanh %249 : vector<2x32xf32>
    %251 = arith.subf %230, %250 : vector<2x32xf32>
    %252 = arith.mulf %243, %251 : vector<2x32xf32>
    %253 = arith.addf %250, %252 : vector<2x32xf32>
    %254 = arith.truncf %253 : vector<2x32xf32> to vector<2x32xbf16>
    %cst_34 = arith.constant dense<0.000000e+00> : vector<2x96xf32>
    %255 = tpu.matmul %254, %200, %cst_34 {dimension_numbers = #tpu.dot_dimension_numbers<[1], [0], [0], [1], [0, 0, 1, 1], [], []>} : vector<2x32xbf16>, vector<32x96xbf16>, vector<2x96xf32> -> vector<2x96xf32>
    %256 = vector.extract_strided_slice %206 {offsets = [4, 0], sizes = [2, 96], strides = [1, 1]} : vector<16x96xf32> to vector<2x96xf32>
    %257 = vector.extract_strided_slice %256 {offsets = [0, 0], sizes = [2, 64], strides = [1, 1]} : vector<2x96xf32> to vector<2x64xf32>
    %258 = vector.extract_strided_slice %255 {offsets = [0, 0], sizes = [2, 64], strides = [1, 1]} : vector<2x96xf32> to vector<2x64xf32>
    %259 = arith.addf %257, %258 : vector<2x64xf32>
    %260 = arith.negf %259 : vector<2x64xf32>
    %261 = math.exp %260 : vector<2x64xf32>
    %cst_35 = arith.constant 1.000000e+00 : f32
    %262 = vector.broadcast %cst_35 : f32 to vector<2x64xf32>
    %263 = arith.addf %262, %261 : vector<2x64xf32>
    %264 = arith.divf %262, %263 : vector<2x64xf32>
    %265 = vector.extract_strided_slice %264 {offsets = [0, 0], sizes = [2, 32], strides = [1, 1]} : vector<2x64xf32> to vector<2x32xf32>
    %266 = vector.extract_strided_slice %264 {offsets = [0, 32], sizes = [2, 32], strides = [1, 1]} : vector<2x64xf32> to vector<2x32xf32>
    %267 = vector.extract_strided_slice %256 {offsets = [0, 64], sizes = [2, 32], strides = [1, 1]} : vector<2x96xf32> to vector<2x32xf32>
    %268 = vector.extract_strided_slice %255 {offsets = [0, 64], sizes = [2, 32], strides = [1, 1]} : vector<2x96xf32> to vector<2x32xf32>
    %269 = vector.broadcast %202 : vector<1x32xf32> to vector<2x32xf32>
    %270 = arith.addf %268, %269 : vector<2x32xf32>
    %271 = arith.mulf %265, %270 : vector<2x32xf32>
    %272 = arith.addf %267, %271 : vector<2x32xf32>
    %273 = math.tanh %272 : vector<2x32xf32>
    %274 = arith.subf %253, %273 : vector<2x32xf32>
    %275 = arith.mulf %266, %274 : vector<2x32xf32>
    %276 = arith.addf %273, %275 : vector<2x32xf32>
    %277 = arith.truncf %276 : vector<2x32xf32> to vector<2x32xbf16>
    %cst_36 = arith.constant dense<0.000000e+00> : vector<2x96xf32>
    %278 = tpu.matmul %277, %200, %cst_36 {dimension_numbers = #tpu.dot_dimension_numbers<[1], [0], [0], [1], [0, 0, 1, 1], [], []>} : vector<2x32xbf16>, vector<32x96xbf16>, vector<2x96xf32> -> vector<2x96xf32>
    %279 = vector.extract_strided_slice %206 {offsets = [6, 0], sizes = [2, 96], strides = [1, 1]} : vector<16x96xf32> to vector<2x96xf32>
    %280 = vector.extract_strided_slice %279 {offsets = [0, 0], sizes = [2, 64], strides = [1, 1]} : vector<2x96xf32> to vector<2x64xf32>
    %281 = vector.extract_strided_slice %278 {offsets = [0, 0], sizes = [2, 64], strides = [1, 1]} : vector<2x96xf32> to vector<2x64xf32>
    %282 = arith.addf %280, %281 : vector<2x64xf32>
    %283 = arith.negf %282 : vector<2x64xf32>
    %284 = math.exp %283 : vector<2x64xf32>
    %cst_37 = arith.constant 1.000000e+00 : f32
    %285 = vector.broadcast %cst_37 : f32 to vector<2x64xf32>
    %286 = arith.addf %285, %284 : vector<2x64xf32>
    %287 = arith.divf %285, %286 : vector<2x64xf32>
    %288 = vector.extract_strided_slice %287 {offsets = [0, 0], sizes = [2, 32], strides = [1, 1]} : vector<2x64xf32> to vector<2x32xf32>
    %289 = vector.extract_strided_slice %287 {offsets = [0, 32], sizes = [2, 32], strides = [1, 1]} : vector<2x64xf32> to vector<2x32xf32>
    %290 = vector.extract_strided_slice %279 {offsets = [0, 64], sizes = [2, 32], strides = [1, 1]} : vector<2x96xf32> to vector<2x32xf32>
    %291 = vector.extract_strided_slice %278 {offsets = [0, 64], sizes = [2, 32], strides = [1, 1]} : vector<2x96xf32> to vector<2x32xf32>
    %292 = vector.broadcast %202 : vector<1x32xf32> to vector<2x32xf32>
    %293 = arith.addf %291, %292 : vector<2x32xf32>
    %294 = arith.mulf %288, %293 : vector<2x32xf32>
    %295 = arith.addf %290, %294 : vector<2x32xf32>
    %296 = math.tanh %295 : vector<2x32xf32>
    %297 = arith.subf %276, %296 : vector<2x32xf32>
    %298 = arith.mulf %289, %297 : vector<2x32xf32>
    %299 = arith.addf %296, %298 : vector<2x32xf32>
    %300 = arith.truncf %299 : vector<2x32xf32> to vector<2x32xbf16>
    %cst_38 = arith.constant dense<0.000000e+00> : vector<2x96xf32>
    %301 = tpu.matmul %300, %200, %cst_38 {dimension_numbers = #tpu.dot_dimension_numbers<[1], [0], [0], [1], [0, 0, 1, 1], [], []>} : vector<2x32xbf16>, vector<32x96xbf16>, vector<2x96xf32> -> vector<2x96xf32>
    %302 = vector.extract_strided_slice %206 {offsets = [8, 0], sizes = [2, 96], strides = [1, 1]} : vector<16x96xf32> to vector<2x96xf32>
    %303 = vector.extract_strided_slice %302 {offsets = [0, 0], sizes = [2, 64], strides = [1, 1]} : vector<2x96xf32> to vector<2x64xf32>
    %304 = vector.extract_strided_slice %301 {offsets = [0, 0], sizes = [2, 64], strides = [1, 1]} : vector<2x96xf32> to vector<2x64xf32>
    %305 = arith.addf %303, %304 : vector<2x64xf32>
    %306 = arith.negf %305 : vector<2x64xf32>
    %307 = math.exp %306 : vector<2x64xf32>
    %cst_39 = arith.constant 1.000000e+00 : f32
    %308 = vector.broadcast %cst_39 : f32 to vector<2x64xf32>
    %309 = arith.addf %308, %307 : vector<2x64xf32>
    %310 = arith.divf %308, %309 : vector<2x64xf32>
    %311 = vector.extract_strided_slice %310 {offsets = [0, 0], sizes = [2, 32], strides = [1, 1]} : vector<2x64xf32> to vector<2x32xf32>
    %312 = vector.extract_strided_slice %310 {offsets = [0, 32], sizes = [2, 32], strides = [1, 1]} : vector<2x64xf32> to vector<2x32xf32>
    %313 = vector.extract_strided_slice %302 {offsets = [0, 64], sizes = [2, 32], strides = [1, 1]} : vector<2x96xf32> to vector<2x32xf32>
    %314 = vector.extract_strided_slice %301 {offsets = [0, 64], sizes = [2, 32], strides = [1, 1]} : vector<2x96xf32> to vector<2x32xf32>
    %315 = vector.broadcast %202 : vector<1x32xf32> to vector<2x32xf32>
    %316 = arith.addf %314, %315 : vector<2x32xf32>
    %317 = arith.mulf %311, %316 : vector<2x32xf32>
    %318 = arith.addf %313, %317 : vector<2x32xf32>
    %319 = math.tanh %318 : vector<2x32xf32>
    %320 = arith.subf %299, %319 : vector<2x32xf32>
    %321 = arith.mulf %312, %320 : vector<2x32xf32>
    %322 = arith.addf %319, %321 : vector<2x32xf32>
    %323 = arith.truncf %322 : vector<2x32xf32> to vector<2x32xbf16>
    %cst_40 = arith.constant dense<0.000000e+00> : vector<2x96xf32>
    %324 = tpu.matmul %323, %200, %cst_40 {dimension_numbers = #tpu.dot_dimension_numbers<[1], [0], [0], [1], [0, 0, 1, 1], [], []>} : vector<2x32xbf16>, vector<32x96xbf16>, vector<2x96xf32> -> vector<2x96xf32>
    %325 = vector.extract_strided_slice %206 {offsets = [10, 0], sizes = [2, 96], strides = [1, 1]} : vector<16x96xf32> to vector<2x96xf32>
    %326 = vector.extract_strided_slice %325 {offsets = [0, 0], sizes = [2, 64], strides = [1, 1]} : vector<2x96xf32> to vector<2x64xf32>
    %327 = vector.extract_strided_slice %324 {offsets = [0, 0], sizes = [2, 64], strides = [1, 1]} : vector<2x96xf32> to vector<2x64xf32>
    %328 = arith.addf %326, %327 : vector<2x64xf32>
    %329 = arith.negf %328 : vector<2x64xf32>
    %330 = math.exp %329 : vector<2x64xf32>
    %cst_41 = arith.constant 1.000000e+00 : f32
    %331 = vector.broadcast %cst_41 : f32 to vector<2x64xf32>
    %332 = arith.addf %331, %330 : vector<2x64xf32>
    %333 = arith.divf %331, %332 : vector<2x64xf32>
    %334 = vector.extract_strided_slice %333 {offsets = [0, 0], sizes = [2, 32], strides = [1, 1]} : vector<2x64xf32> to vector<2x32xf32>
    %335 = vector.extract_strided_slice %333 {offsets = [0, 32], sizes = [2, 32], strides = [1, 1]} : vector<2x64xf32> to vector<2x32xf32>
    %336 = vector.extract_strided_slice %325 {offsets = [0, 64], sizes = [2, 32], strides = [1, 1]} : vector<2x96xf32> to vector<2x32xf32>
    %337 = vector.extract_strided_slice %324 {offsets = [0, 64], sizes = [2, 32], strides = [1, 1]} : vector<2x96xf32> to vector<2x32xf32>
    %338 = vector.broadcast %202 : vector<1x32xf32> to vector<2x32xf32>
    %339 = arith.addf %337, %338 : vector<2x32xf32>
    %340 = arith.mulf %334, %339 : vector<2x32xf32>
    %341 = arith.addf %336, %340 : vector<2x32xf32>
    %342 = math.tanh %341 : vector<2x32xf32>
    %343 = arith.subf %322, %342 : vector<2x32xf32>
    %344 = arith.mulf %335, %343 : vector<2x32xf32>
    %345 = arith.addf %342, %344 : vector<2x32xf32>
    %346 = arith.truncf %345 : vector<2x32xf32> to vector<2x32xbf16>
    %cst_42 = arith.constant dense<0.000000e+00> : vector<2x96xf32>
    %347 = tpu.matmul %346, %200, %cst_42 {dimension_numbers = #tpu.dot_dimension_numbers<[1], [0], [0], [1], [0, 0, 1, 1], [], []>} : vector<2x32xbf16>, vector<32x96xbf16>, vector<2x96xf32> -> vector<2x96xf32>
    %348 = vector.extract_strided_slice %206 {offsets = [12, 0], sizes = [2, 96], strides = [1, 1]} : vector<16x96xf32> to vector<2x96xf32>
    %349 = vector.extract_strided_slice %348 {offsets = [0, 0], sizes = [2, 64], strides = [1, 1]} : vector<2x96xf32> to vector<2x64xf32>
    %350 = vector.extract_strided_slice %347 {offsets = [0, 0], sizes = [2, 64], strides = [1, 1]} : vector<2x96xf32> to vector<2x64xf32>
    %351 = arith.addf %349, %350 : vector<2x64xf32>
    %352 = arith.negf %351 : vector<2x64xf32>
    %353 = math.exp %352 : vector<2x64xf32>
    %cst_43 = arith.constant 1.000000e+00 : f32
    %354 = vector.broadcast %cst_43 : f32 to vector<2x64xf32>
    %355 = arith.addf %354, %353 : vector<2x64xf32>
    %356 = arith.divf %354, %355 : vector<2x64xf32>
    %357 = vector.extract_strided_slice %356 {offsets = [0, 0], sizes = [2, 32], strides = [1, 1]} : vector<2x64xf32> to vector<2x32xf32>
    %358 = vector.extract_strided_slice %356 {offsets = [0, 32], sizes = [2, 32], strides = [1, 1]} : vector<2x64xf32> to vector<2x32xf32>
    %359 = vector.extract_strided_slice %348 {offsets = [0, 64], sizes = [2, 32], strides = [1, 1]} : vector<2x96xf32> to vector<2x32xf32>
    %360 = vector.extract_strided_slice %347 {offsets = [0, 64], sizes = [2, 32], strides = [1, 1]} : vector<2x96xf32> to vector<2x32xf32>
    %361 = vector.broadcast %202 : vector<1x32xf32> to vector<2x32xf32>
    %362 = arith.addf %360, %361 : vector<2x32xf32>
    %363 = arith.mulf %357, %362 : vector<2x32xf32>
    %364 = arith.addf %359, %363 : vector<2x32xf32>
    %365 = math.tanh %364 : vector<2x32xf32>
    %366 = arith.subf %345, %365 : vector<2x32xf32>
    %367 = arith.mulf %358, %366 : vector<2x32xf32>
    %368 = arith.addf %365, %367 : vector<2x32xf32>
    %369 = arith.truncf %368 : vector<2x32xf32> to vector<2x32xbf16>
    %cst_44 = arith.constant dense<0.000000e+00> : vector<2x96xf32>
    %370 = tpu.matmul %369, %200, %cst_44 {dimension_numbers = #tpu.dot_dimension_numbers<[1], [0], [0], [1], [0, 0, 1, 1], [], []>} : vector<2x32xbf16>, vector<32x96xbf16>, vector<2x96xf32> -> vector<2x96xf32>
    %371 = vector.extract_strided_slice %206 {offsets = [14, 0], sizes = [2, 96], strides = [1, 1]} : vector<16x96xf32> to vector<2x96xf32>
    %372 = vector.extract_strided_slice %371 {offsets = [0, 0], sizes = [2, 64], strides = [1, 1]} : vector<2x96xf32> to vector<2x64xf32>
    %373 = vector.extract_strided_slice %370 {offsets = [0, 0], sizes = [2, 64], strides = [1, 1]} : vector<2x96xf32> to vector<2x64xf32>
    %374 = arith.addf %372, %373 : vector<2x64xf32>
    %375 = arith.negf %374 : vector<2x64xf32>
    %376 = math.exp %375 : vector<2x64xf32>
    %cst_45 = arith.constant 1.000000e+00 : f32
    %377 = vector.broadcast %cst_45 : f32 to vector<2x64xf32>
    %378 = arith.addf %377, %376 : vector<2x64xf32>
    %379 = arith.divf %377, %378 : vector<2x64xf32>
    %380 = vector.extract_strided_slice %379 {offsets = [0, 0], sizes = [2, 32], strides = [1, 1]} : vector<2x64xf32> to vector<2x32xf32>
    %381 = vector.extract_strided_slice %379 {offsets = [0, 32], sizes = [2, 32], strides = [1, 1]} : vector<2x64xf32> to vector<2x32xf32>
    %382 = vector.extract_strided_slice %371 {offsets = [0, 64], sizes = [2, 32], strides = [1, 1]} : vector<2x96xf32> to vector<2x32xf32>
    %383 = vector.extract_strided_slice %370 {offsets = [0, 64], sizes = [2, 32], strides = [1, 1]} : vector<2x96xf32> to vector<2x32xf32>
    %384 = vector.broadcast %202 : vector<1x32xf32> to vector<2x32xf32>
    %385 = arith.addf %383, %384 : vector<2x32xf32>
    %386 = arith.mulf %380, %385 : vector<2x32xf32>
    %387 = arith.addf %382, %386 : vector<2x32xf32>
    %388 = math.tanh %387 : vector<2x32xf32>
    %389 = arith.subf %368, %388 : vector<2x32xf32>
    %390 = arith.mulf %381, %389 : vector<2x32xf32>
    %391 = arith.addf %388, %390 : vector<2x32xf32>
    %c0_46 = arith.constant 0 : index
    %c0_47 = arith.constant 0 : index
    %392 = vector.load %arg3[%c0_46, %c0_47] : memref<33x4xf32, #tpu.memory_space<vmem>>, vector<32x4xf32>
    %393 = arith.truncf %392 : vector<32x4xf32> to vector<32x4xbf16>
    %c32_48 = arith.constant 32 : index
    %c0_49 = arith.constant 0 : index
    %394 = vector.load %arg3[%c32_48, %c0_49] : memref<33x4xf32, #tpu.memory_space<vmem>>, vector<1x4xf32>
    %395 = arith.truncf %391 : vector<2x32xf32> to vector<2x32xbf16>
    %cst_50 = arith.constant dense<0.000000e+00> : vector<2x4xf32>
    %396 = tpu.matmul %395, %393, %cst_50 {dimension_numbers = #tpu.dot_dimension_numbers<[1], [0], [0], [1], [0, 0, 1, 1], [], []>} : vector<2x32xbf16>, vector<32x4xbf16>, vector<2x4xf32> -> vector<2x4xf32>
    %397 = vector.broadcast %394 : vector<1x4xf32> to vector<2x4xf32>
    %398 = arith.addf %396, %397 : vector<2x4xf32>
    %c0_51 = arith.constant 0 : index
    %c0_52 = arith.constant 0 : index
    %399 = vector.load %arg4[%c0_51, %c0_52] : memref<2x4xf32, #tpu.memory_space<vmem>>, vector<2x4xf32>
    tpu.vector_store %arg4[%c0_51, %c0_52], %398 {strides = array<i32>} : memref<2x4xf32, #tpu.memory_space<vmem>>, vector<2x4xf32>,
    return
  }
}

</mosaic_0001>

<bundles_post_ra>
// kernel: tpu_custom_call.1
= control target key start
LH: loop header
LB: loop body
LE: loop exit
PB: predicated region body
PF: predicated region fallthrough
CT: control target
= control target key end

     0   :  { %9 = vsyncpa [#allocation3], 0  ;;  %s2437_s0 = inlined_call_operand.vmem [shape: f32[16,16], index: 0, kind: input, shape index: {}]   ;;  %s2438_s1 = inlined_call_operand.hbm [shape: f32[50,96], index: 1, kind: input, shape index: {}]   ;;  %s2439_s2 = inlined_call_operand.hbm [shape: f32[66,96], index: 2, kind: input, shape index: {}]   ;;  %s2440_s3 = inlined_call_operand.vmem [shape: f32[33,4], index: 3, kind: input, shape index: {}]   ;;  %s2441_s4 = inlined_call_operand.hbm [shape: f32[2,4], index: 4, kind: output, shape index: {}]  }
   0x1   :  { %10 = vsyncpa [#allocation6], 0 }
   0x2   :  { %11 = vsyncpa [#allocation4], 0  ;;  %s2029_s15 = smov [#allocation2]   ;;  %s1957_s19 = scalar_lea.hbm %s2438_s1, 896 }
   0x3   :  { %s19_s16 = sshll.u32 %s2029_s15, 4  ;;  %p1958_p0 = scmp.ne.s32.totalorder %s2438_s1, %s1957_s19  ;;  %s20_s16 = int_to_ptr.vmem [resolvable:$true] %s19_s16 }
   0x4   :  { %p1961_p1 = scmp.lt.u32.totalorder %s1957_s19, %s2438_s1 }
   0x6   :  { %p1963_p2 = pnand %p1961_p1, %p1958_p0 }
   0x8   :  { %1966 = shalt.err (!%p1963_p2)
}
   0x9   :  { %s1967_s24 = scalar_lea.vmem %s20_s16, 896  ;;  %p1972_p4 = scmp.lt.s32.totalorder %s20_s16, %s20_s16 }
   0xa   :  { %p1968_p3 = scmp.ne.s32.totalorder %s20_s16, %s1967_s24  ;;  %p1973_p5 = scmp.lt.s32.totalorder %s1967_s24, %s1967_s24 }
   0xc   :  { %p1974_p6 = por %p1973_p5, %p1972_p4 }
   0xe   :  { %p1975_p7 = pnand %p1974_p6, %p1968_p3 }
  0x10   :  { %1978 = shalt.err (!%p1975_p7)
}
  0x11   :  { %s2030_s25 = smov 128   ;;  %s2031_s26 = smov 8  }
  0x12   :  { %25 = dma.hbm_to_vmem [thread:$0]  %s2438_s1, 896, %s20_s16, [#allocation3], %s2030_s25, %s2030_s25, %s2031_s26  }
  0x13   :  { %s2032_s29 = smov [#allocation5]   ;;  %s1979_s7 = scalar_lea.hbm %s2439_s2, 1152 }
  0x14   :  { %s31_s30 = sshll.u32 %s2032_s29, 4  ;;  %p1980_p8 = scmp.ne.s32.totalorder %s2439_s2, %s1979_s7  ;;  %s32_s30 = int_to_ptr.vmem [resolvable:$true] %s31_s30 }
  0x15   :  { %p1983_p9 = scmp.lt.u32.totalorder %s1979_s7, %s2439_s2 }
  0x17   :  { %p1985_p10 = pnand %p1983_p9, %p1980_p8 }
  0x19   :  { %1988 = shalt.err (!%p1985_p10)
}
  0x1a   :  { %s1989_s12 = scalar_lea.vmem %s32_s30, 1152  ;;  %p1994_p12 = scmp.lt.s32.totalorder %s32_s30, %s32_s30 }
  0x1b   :  { %p1990_p11 = scmp.ne.s32.totalorder %s32_s30, %s1989_s12  ;;  %p1995_p13 = scmp.lt.s32.totalorder %s1989_s12, %s1989_s12 }
  0x1d   :  { %p1996_p0 = por %p1995_p13, %p1994_p12 }
  0x1f   :  { %p1997_p1 = pnand %p1996_p0, %p1990_p11 }
  0x21   :  { %2000 = shalt.err (!%p1997_p1)
}
  0x22   :  { %37 = dma.hbm_to_vmem [thread:$0]  %s2439_s2, 1152, %s32_s30, [#allocation6], %s2030_s25, %s2030_s25, %s2031_s26  }
  0x23   :  { %2023 = dma.done.wait [#allocation3], 896  }
  0x24   :  { %2024 = vsyncadd [#allocation3], 4294966400 }
  0x25   :  { %2025 = dma.done.wait [#allocation6], 1152  }
  0x26   :  { %2026 = vsyncadd [#allocation6], 4294966144  ;;  %v2033_v0 = vmov 0.0   ;;  %vm2034_vm0 = vmmov 0   ;;  %v52_v1 = vld [vmem:[#allocation2 + $0x10] sm:$0xff]  ;;  %v53_v2 = vld [vmem:[#allocation2 + $0x18] sm:$0xff] }
  0x27   :  { %1706 = vmatprep.subr.bf16.mxu1 %v2033_v0  ;;  %1700 = vmatprep.subr.bf16.mxu0 %v2033_v0  ;;  %v49_v3 = vld [vmem:[#allocation2] sm:$0xff]  ;;  %v2095_v4 = vpack.c.bf16 %v53_v2, %v52_v1  ;;  %v50_v5 = vld [vmem:[#allocation2 + $0x8] sm:$0xff]  ;;  %vm65_vm1 = vcmask 130048   ;;  %v2035_v13 = vmov 0   ;;  %v2123_v15 = vld [vmem:[#allocation2 + $0x31] ss:$0 sm:$0xff] }
  0x28   :  { %1702 = vmatprep.mubr.msk.bf16.mxu0 %vm2034_vm0, %v2033_v0  ;;  %1710 = vmatprep.mubr.msk.bf16.mxu1 %vm2034_vm0, %v2033_v0  ;;  %v54_v6 = vld [vmem:[#allocation2 + $0x20] sm:$0xff]  ;;  %v55_v7 = vld [vmem:[#allocation2 + $0x28] sm:$0xff]  ;;  %v51_v8 = vpack.c.bf16 %v50_v5, %v49_v3  ;;  %v1606_v17 = vld [vmem:[#allocation2 + $0x30] ss:$0 sm:$0xff]  ;;  %s2037_s17 = smov 96   ;;  %s2038_s18 = smov 32  }
  0x29   :  { %v47_v9 = vld [vmem:[%s2437_s0] sm:$0xff]  ;;  %v48_v10 = vld [vmem:[%s2437_s0 + $0x8] sm:$0xff]  ;;  %1707 = vmatpush3.bf16.msra.mxu1 %v2095_v4  ;;  %v2104_v11 = vpack.c.bf16 %v55_v7, %v54_v6  ;;  %s2036_s0 = smov 64   ;;  %vm110_vm2 = vcmask 261120   ;;  %vm784_vm3 = vcmask 1041408   ;;  %vm786_vm4 = vcmask 1043456  }
  0x2a   :  { %v60_v12 = vpack.c.bf16 %v48_v10, %v47_v9  ;;  %1701 = vmatpush3.bf16.msra.mxu0 %v51_v8  ;;  %1708 = vmatprep.subr.bf16.mxu1 %v2033_v0  ;;  %vm788_vm5 = vcmask 1045504   ;;  %s2039_s29 = smov [#allocation7]   ;;  %vm1588_vm6 = vcmask 25600  }
  0x2b   :  { %1714 = vmatprep.subr.bf16.mxu0 %v2033_v0  ;;  %s1596_s30 = sshll.u32 %s2039_s29, 4  ;;  %s1597_s30 = int_to_ptr.vmem [resolvable:$true] %s1596_s30 }
  0x2c   :  { %s2001_s5 = scalar_lea.vmem %s1597_s30, 32  ;;  %p2006_p3 = scmp.lt.s32.totalorder %s1597_s30, %s1597_s30 }
  0x2d   :  { %1709 = vmatpush3.bf16.msra.mxu1 %v2104_v11  ;;  %1703 = vmatmul.mubr.msk.bf16.vlgmr.msra.gmra.mrb[0].mxu0 %vm65_vm1, %v60_v12  ;;  %p2002_p2 = scmp.ne.s32.totalorder %s1597_s30, %s2001_s5  ;;  %p2007_p4 = scmp.lt.s32.totalorder %s2001_s5, %s2001_s5 }
  0x2e   :  { %1715 = vmatpush3.bf16.msra.mxu0 %v2095_v4  ;;  %1718 = vmatprep.mubr.msk.bf16.mxu0 %vm2034_vm0, %v2033_v0 }
  0x2f   :  { %1716 = vmatprep.subr.bf16.mxu0 %v2033_v0  ;;  %1722 = vmatprep.subr.bf16.mxu1 %v2033_v0  ;;  %p2008_p5 = por %p2007_p4, %p2006_p3 }
  0x30   :  { %1711 = vmatmul.mubr.bf16.vlgmr.msra.gmra.mrb[0].mxu1 %v2035_v13 }
  0x31   :  { %1723 = vmatpush3.bf16.msra.mxu1 %v2095_v4  ;;  %1726 = vmatprep.mubr.msk.bf16.mxu1 %vm2034_vm0, %v2033_v0  ;;  %p2009_p6 = pnand %p2008_p5, %p2002_p2 }
  0x32   :  { %1717 = vmatpush3.bf16.msra.mxu0 %v2104_v11  ;;  %1724 = vmatprep.subr.bf16.mxu1 %v2033_v0 }
  0x33   :  { %1730 = vmatprep.subr.bf16.mxu0 %v2033_v0 }
  0x35   :  { %1725 = vmatpush3.bf16.msra.mxu1 %v2104_v11 }
  0x36   :  { %1738 = vmatprep.subr.bf16.mxu1 %v2033_v0 }
 0x100   :  { %v103_v14 = vpop.f32.mrb[0].mxu0 }
 0x101   :  { %v1704_v16 = vpop.f32.mrb[1].mxu0  ;;  %v2129_v26 = vadd.f32 %v1606_v17, %v103_v14 }
 0x102   :  { %v106_v18 = vpop.f32.mrb[2].mxu0 }
 0x103   :  { %v148_v19 = vpop.f32.mrb[0].mxu1  ;;  %v2125_v20 = vadd.f32 %v1606_v17, %v106_v18  ;;  %v1705_v21 = vpop.f32.mrb[3].mxu0 }
 0x104   :  { %v1712_v22 = vpop.f32.mrb[1].mxu1  ;;  %v165_v23 = vadd.f32 %v2123_v15, %v148_v19  ;;  %v154_v27 = vadd.f32 %v148_v19, %v2129_v26 }
 0x105   :  { %v151_v24 = vpop.f32.mrb[2].mxu1 }
 0x106   :  { %167 = vrot.lane.b32.xlu0 %v165_v23, %s2036_s0  ;;  %v1713_v25 = vpop.f32.mrb[3].mxu1  ;;  %v1608_v28 = vmul.f32 -1.442695, %v154_v27 }
 0x108   :  { %1861 = vpow2.f32 %v1608_v28 }
 0x112   :  { %v1862_v29 = vpop.eup %1861 }
 0x113   :  { %v158_v30 = vadd.f32 1.0, %v1862_v29 }
 0x115   :  { %1863 = vrcp.f32 %v158_v30 }
 0x11f   :  { %v1864_v31 = vpop.eup %1863 }
 0x178   :  { %v168_v32 = vpop.permute.xlu0 %167 }
 0x179   :  { %v170_v33 = vmul.f32 %v1864_v31, %v168_v32 }
 0x17b   :  { %172 = vrot.lane.b32.xlu0 %v170_v33, %s2036_s0 }
 0x1ed   :  { %v173_v34 = vpop.permute.xlu0 %172 }
 0x1ee   :  { %v175_v35 = vadd.f32 %v173_v34, %v2129_v26 }
 0x1f0   :  { %1865 = vtanh.f32 %v175_v35 }
 0x1fa   :  { %v1866_v36 = vpop.eup %1865 }
 0x1fb   :  { %v177_v37 = vsub.f32 0.0, %v1866_v36 }
 0x1fd   :  { %179 = vrot.lane.b32.xlu1 %v177_v37, %s2037_s17 }
 0x26f   :  { %v180_v38 = vpop.permute.xlu1 %179 }
 0x270   :  { %v182_v39 = vmul.f32 %v1864_v31, %v180_v38 }
 0x272   :  { %184 = vrot.lane.b32.xlu1 %v182_v39, %s2038_s18 }
 0x2e4   :  { %v185_v40 = vpop.permute.xlu1 %184 }
 0x2e5   :  { %v2136_v41 = vadd.f32 %v1866_v36, %v185_v40 }
 0x2e7   :  { %v188_v42 = vpack.c.bf16 %v2136_v41, %v2136_v41 }
 0x2e9   :  { %190 = vrot.lane.b32.xlu0 %v188_v42, %s2036_s0 }
 0x35b   :  { %v191_v43 = vpop.permute.xlu0 %190 }
 0x35c   :  { %1719 = vmatmul.mubr.msk.bf16.vlgmr.msra.gmra.mrb[4].mxu0 %vm110_vm2, %v191_v43 }
 0x35d   :  { %1731 = vmatpush3.bf16.msra.mxu0 %v2095_v4  ;;  %1734 = vmatprep.mubr.msk.bf16.mxu0 %vm2034_vm0, %v2033_v0 }
 0x35e   :  { %1732 = vmatprep.subr.bf16.mxu0 %v2033_v0 }
 0x361   :  { %1733 = vmatpush3.bf16.msra.mxu0 %v2104_v11 }
 0x362   :  { %1746 = vmatprep.subr.bf16.mxu0 %v2033_v0 }
 0x42f   :  { %v229_v44 = vpop.f32.mrb[4].mxu0 }
 0x430   :  { %v245_v45 = vadd.f32 %v2123_v15, %v229_v44  ;;  %v1720_v46 = vpop.f32.mrb[5].mxu0  ;;  %v236_v50 = vrot.slane %v229_v44, 6 }
 0x431   :  { %v232_v47 = vpop.f32.mrb[6].mxu0 }
 0x432   :  { %v247_v48 = vrot.slane %v245_v45, 6  ;;  %v1721_v49 = vpop.f32.mrb[7].mxu0  ;;  %v238_v51 = vadd.f32 %v236_v50, %v2129_v26 }
 0x434   :  { %248 = vrot.lane.b32.xlu1 %v247_v48, %s2036_s0  ;;  %v1611_v52 = vmul.f32 -1.442695, %v238_v51 }
 0x436   :  { %1867 = vpow2.f32 %v1611_v52 }
 0x440   :  { %v1868_v53 = vpop.eup %1867 }
 0x441   :  { %v242_v54 = vadd.f32 1.0, %v1868_v53 }
 0x443   :  { %1869 = vrcp.f32 %v242_v54 }
 0x44d   :  { %v1870_v55 = vpop.eup %1869 }
 0x4a6   :  { %v249_v56 = vpop.permute.xlu1 %248 }
 0x4a7   :  { %v251_v57 = vmul.f32 %v1870_v55, %v249_v56 }
 0x4a9   :  { %253 = vrot.lane.b32.xlu0 %v251_v57, %s2036_s0 }
 0x51b   :  { %v254_v58 = vpop.permute.xlu0 %253 }
 0x51c   :  { %v256_v59 = vadd.f32 %v254_v58, %v2129_v26 }
 0x51e   :  { %1871 = vtanh.f32 %v256_v59 }
 0x528   :  { %v1872_v60 = vpop.eup %1871 }
 0x529   :  { %v259_v61 = vrot.slane %v1872_v60, 2 }
 0x52b   :  { %v261_v62 = vsub.f32 %v2136_v41, %v259_v61 }
 0x52d   :  { %v263_v63 = vrot.slane %v261_v62, 6 }
 0x52f   :  { %264 = vrot.lane.b32.xlu1 %v263_v63, %s2037_s17 }
 0x5a1   :  { %v265_v1 = vpop.permute.xlu1 %264 }
 0x5a2   :  { %v267_v2 = vmul.f32 %v1870_v55, %v265_v1 }
 0x5a4   :  { %269 = vrot.lane.b32.xlu0 %v267_v2, %s2038_s18 }
 0x616   :  { %v270_v3 = vpop.permute.xlu0 %269 }
 0x617   :  { %v2156_v5 = vadd.f32 %v1872_v60, %v270_v3 }
 0x619   :  { %v273_v6 = vpack.c.bf16 %v2156_v5, %v2156_v5 }
 0x61b   :  { %v275_v7 = vrot.slane %v273_v6, 1 }
 0x61d   :  { %276 = vrot.lane.b32.xlu1 %v275_v7, %s2036_s0 }
 0x68f   :  { %v277_v8 = vpop.permute.xlu1 %276 }
 0x690   :  { %1727 = vmatmul.mubr.msk.bf16.vlgmr.msra.gmra.mrb[4].mxu1 %vm110_vm2, %v277_v8 }
 0x691   :  { %1739 = vmatpush3.bf16.msra.mxu1 %v2095_v4  ;;  %1742 = vmatprep.mubr.msk.bf16.mxu1 %vm2034_vm0, %v2033_v0 }
 0x692   :  { %1740 = vmatprep.subr.bf16.mxu1 %v2033_v0 }
 0x695   :  { %1741 = vmatpush3.bf16.msra.mxu1 %v2104_v11 }
 0x696   :  { %1754 = vmatprep.subr.bf16.mxu1 %v2033_v0 }
 0x763   :  { %v315_v9 = vpop.f32.mrb[4].mxu1 }
 0x764   :  { %v331_v10 = vadd.f32 %v2123_v15, %v315_v9  ;;  %v1728_v12 = vpop.f32.mrb[5].mxu1  ;;  %v322_v18 = vrot.slane %v315_v9, 4 }
 0x765   :  { %v318_v14 = vpop.f32.mrb[6].mxu1 }
 0x766   :  { %v333_v16 = vrot.slane %v331_v10, 4  ;;  %v1729_v17 = vpop.f32.mrb[7].mxu1  ;;  %v324_v19 = vadd.f32 %v322_v18, %v2129_v26 }
 0x768   :  { %334 = vrot.lane.b32.xlu0 %v333_v16, %s2036_s0  ;;  %v1613_v21 = vmul.f32 -1.442695, %v324_v19 }
 0x76a   :  { %1873 = vpow2.f32 %v1613_v21 }
 0x774   :  { %v1874_v22 = vpop.eup %1873 }
 0x775   :  { %v328_v23 = vadd.f32 1.0, %v1874_v22 }
 0x777   :  { %1875 = vrcp.f32 %v328_v23 }
 0x781   :  { %v1876_v24 = vpop.eup %1875 }
 0x7da   :  { %v335_v25 = vpop.permute.xlu0 %334 }
 0x7db   :  { %v337_v27 = vmul.f32 %v1876_v24, %v335_v25 }
 0x7dd   :  { %339 = vrot.lane.b32.xlu1 %v337_v27, %s2036_s0 }
 0x84f   :  { %v340_v28 = vpop.permute.xlu1 %339 }
 0x850   :  { %v342_v29 = vadd.f32 %v340_v28, %v2129_v26 }
 0x852   :  { %1877 = vtanh.f32 %v342_v29 }
 0x85c   :  { %v1878_v30 = vpop.eup %1877 }
 0x85d   :  { %v345_v31 = vrot.slane %v1878_v30, 2 }
 0x85f   :  { %v347_v32 = vsub.f32 %v2156_v5, %v345_v31 }
 0x861   :  { %v349_v33 = vrot.slane %v347_v32, 6 }
 0x863   :  { %350 = vrot.lane.b32.xlu0 %v349_v33, %s2037_s17 }
 0x8d5   :  { %v351_v34 = vpop.permute.xlu0 %350 }
 0x8d6   :  { %v353_v35 = vmul.f32 %v1876_v24, %v351_v34 }
 0x8d8   :  { %355 = vrot.lane.b32.xlu1 %v353_v35, %s2038_s18 }
 0x94a   :  { %v356_v36 = vpop.permute.xlu1 %355 }
 0x94b   :  { %v2176_v37 = vadd.f32 %v1878_v30, %v356_v36 }
 0x94d   :  { %v359_v38 = vpack.c.bf16 %v2176_v37, %v2176_v37 }
 0x94f   :  { %v361_v39 = vrot.slane %v359_v38, 2 }
 0x951   :  { %362 = vrot.lane.b32.xlu0 %v361_v39, %s2036_s0 }
 0x9c3   :  { %v363_v40 = vpop.permute.xlu0 %362 }
 0x9c4   :  { %1735 = vmatmul.mubr.msk.bf16.vlgmr.msra.gmra.mrb[8].mxu0 %vm110_vm2, %v363_v40 }
 0x9c5   :  { %1747 = vmatpush3.bf16.msra.mxu0 %v2095_v4  ;;  %1750 = vmatprep.mubr.msk.bf16.mxu0 %vm2034_vm0, %v2033_v0 }
 0x9c6   :  { %1748 = vmatprep.subr.bf16.mxu0 %v2033_v0 }
 0x9c9   :  { %1749 = vmatpush3.bf16.msra.mxu0 %v2104_v11 }
 0x9ca   :  { %1762 = vmatprep.subr.bf16.mxu0 %v2033_v0 }
 0xa97   :  { %v401_v42 = vpop.f32.mrb[8].mxu0 }
 0xa98   :  { %v417_v43 = vadd.f32 %v2123_v15, %v401_v42  ;;  %v1736_v44 = vpop.f32.mrb[9].mxu0  ;;  %v408_v48 = vrot.slane %v401_v42, 2 }
 0xa99   :  { %v404_v45 = vpop.f32.mrb[10].mxu0 }
 0xa9a   :  { %v419_v46 = vrot.slane %v417_v43, 2  ;;  %v1737_v47 = vpop.f32.mrb[11].mxu0  ;;  %v410_v49 = vadd.f32 %v408_v48, %v2129_v26 }
 0xa9c   :  { %420 = vrot.lane.b32.xlu1 %v419_v46, %s2036_s0  ;;  %v1615_v50 = vmul.f32 -1.442695, %v410_v49 }
 0xa9e   :  { %1879 = vpow2.f32 %v1615_v50 }
 0xaa8   :  { %v1880_v51 = vpop.eup %1879 }
 0xaa9   :  { %v414_v52 = vadd.f32 1.0, %v1880_v51 }
 0xaab   :  { %1881 = vrcp.f32 %v414_v52 }
 0xab5   :  { %v1882_v53 = vpop.eup %1881 }
 0xb0e   :  { %v421_v54 = vpop.permute.xlu1 %420 }
 0xb0f   :  { %v423_v55 = vmul.f32 %v1882_v53, %v421_v54 }
 0xb11   :  { %425 = vrot.lane.b32.xlu0 %v423_v55, %s2036_s0 }
 0xb83   :  { %v426_v56 = vpop.permute.xlu0 %425 }
 0xb84   :  { %v428_v57 = vadd.f32 %v426_v56, %v2129_v26 }
 0xb86   :  { %1883 = vtanh.f32 %v428_v57 }
 0xb90   :  { %v1884_v58 = vpop.eup %1883 }
 0xb91   :  { %v431_v59 = vrot.slane %v1884_v58, 2 }
 0xb93   :  { %v433_v60 = vsub.f32 %v2176_v37, %v431_v59 }
 0xb95   :  { %v435_v61 = vrot.slane %v433_v60, 6 }
 0xb97   :  { %436 = vrot.lane.b32.xlu1 %v435_v61, %s2037_s17 }
 0xc09   :  { %v437_v62 = vpop.permute.xlu1 %436 }
 0xc0a   :  { %v439_v63 = vmul.f32 %v1882_v53, %v437_v62 }
 0xc0c   :  { %441 = vrot.lane.b32.xlu0 %v439_v63, %s2038_s18 }
 0xc7e   :  { %v442_v1 = vpop.permute.xlu0 %441 }
 0xc7f   :  { %v2196_v2 = vadd.f32 %v1884_v58, %v442_v1 }
 0xc81   :  { %v445_v3 = vpack.c.bf16 %v2196_v2, %v2196_v2 }
 0xc83   :  { %v447_v6 = vrot.slane %v445_v3, 3 }
 0xc85   :  { %448 = vrot.lane.b32.xlu1 %v447_v6, %s2036_s0 }
 0xcf7   :  { %v449_v26 = vpop.permute.xlu1 %448 }
 0xcf8   :  { %1743 = vmatmul.mubr.msk.bf16.vlgmr.msra.gmra.mrb[8].mxu1 %vm110_vm2, %v449_v26 }
 0xcf9   :  { %1755 = vmatpush3.bf16.msra.mxu1 %v2095_v4  ;;  %1758 = vmatprep.mubr.msk.bf16.mxu1 %vm2034_vm0, %v2033_v0 }
 0xcfa   :  { %1756 = vmatprep.subr.bf16.mxu1 %v2033_v0 }
 0xcfd   :  { %1757 = vmatpush3.bf16.msra.mxu1 %v2104_v11 }
 0xcfe   :  { %1770 = vmatprep.subr.bf16.mxu1 %v2033_v0 }
 0xdcb   :  { %v487_v7 = vpop.f32.mrb[8].mxu1 }
 0xdcc   :  { %v500_v8 = vadd.f32 %v2123_v15, %v487_v7  ;;  %v1744_v9 = vpop.f32.mrb[9].mxu1  ;;  %v493_v14 = vadd.f32 %v487_v7, %v2125_v20 }
 0xdcd   :  { %v490_v10 = vpop.f32.mrb[10].mxu1 }
 0xdce   :  { %502 = vrot.lane.b32.xlu0 %v500_v8, %s2036_s0  ;;  %v1745_v12 = vpop.f32.mrb[11].mxu1  ;;  %v1617_v16 = vmul.f32 -1.442695, %v493_v14 }
 0xdd0   :  { %1885 = vpow2.f32 %v1617_v16 }
 0xdda   :  { %v1886_v17 = vpop.eup %1885 }
 0xddb   :  { %v497_v18 = vadd.f32 1.0, %v1886_v17 }
 0xddd   :  { %1887 = vrcp.f32 %v497_v18 }
 0xde7   :  { %v1888_v19 = vpop.eup %1887 }
 0xe40   :  { %v503_v21 = vpop.permute.xlu0 %502 }
 0xe41   :  { %v505_v22 = vmul.f32 %v1888_v19, %v503_v21 }
 0xe43   :  { %507 = vrot.lane.b32.xlu1 %v505_v22, %s2036_s0 }
 0xeb5   :  { %v508_v23 = vpop.permute.xlu1 %507 }
 0xeb6   :  { %v510_v24 = vadd.f32 %v508_v23, %v2125_v20 }
 0xeb8   :  { %1889 = vtanh.f32 %v510_v24 }
 0xec2   :  { %v1890_v25 = vpop.eup %1889 }
 0xec3   :  { %v513_v27 = vrot.slane %v1890_v25, 2 }
 0xec5   :  { %v515_v28 = vsub.f32 %v2196_v2, %v513_v27 }
 0xec7   :  { %v517_v29 = vrot.slane %v515_v28, 6 }
 0xec9   :  { %518 = vrot.lane.b32.xlu0 %v517_v29, %s2037_s17 }
 0xf3b   :  { %v519_v30 = vpop.permute.xlu0 %518 }
 0xf3c   :  { %v521_v31 = vmul.f32 %v1888_v19, %v519_v30 }
 0xf3e   :  { %523 = vrot.lane.b32.xlu1 %v521_v31, %s2038_s18 }
 0xfb0   :  { %v524_v32 = vpop.permute.xlu1 %523 }
 0xfb1   :  { %v2216_v33 = vadd.f32 %v1890_v25, %v524_v32 }
 0xfb3   :  { %v527_v34 = vpack.c.bf16 %v2216_v33, %v2216_v33 }
 0xfb5   :  { %529 = vrot.lane.b32.xlu0 %v527_v34, %s2036_s0 }
0x1027   :  { %v530_v35 = vpop.permute.xlu0 %529 }
0x1028   :  { %1751 = vmatmul.mubr.msk.bf16.vlgmr.msra.gmra.mrb[12].mxu0 %vm110_vm2, %v530_v35 }
0x1029   :  { %1763 = vmatpush3.bf16.msra.mxu0 %v2095_v4  ;;  %1766 = vmatprep.mubr.msk.bf16.mxu0 %vm2034_vm0, %v2033_v0 }
0x102a   :  { %1764 = vmatprep.subr.bf16.mxu0 %v2033_v0 }
0x102d   :  { %1765 = vmatpush3.bf16.msra.mxu0 %v2104_v11 }
0x102e   :  { %1778 = vmatprep.subr.bf16.mxu0 %v2033_v0 }
0x10fb   :  { %v568_v36 = vpop.f32.mrb[12].mxu0 }
0x10fc   :  { %v584_v38 = vadd.f32 %v2123_v15, %v568_v36  ;;  %v1752_v39 = vpop.f32.mrb[13].mxu0  ;;  %v575_v44 = vrot.slane %v568_v36, 6 }
0x10fd   :  { %v571_v40 = vpop.f32.mrb[14].mxu0 }
0x10fe   :  { %v586_v42 = vrot.slane %v584_v38, 6  ;;  %v1753_v43 = vpop.f32.mrb[15].mxu0  ;;  %v577_v4 = vadd.f32 %v575_v44, %v2125_v20 }
0x1100   :  { %587 = vrot.lane.b32.xlu1 %v586_v42, %s2036_s0  ;;  %v1619_v45 = vmul.f32 -1.442695, %v577_v4 }
0x1102   :  { %1891 = vpow2.f32 %v1619_v45 }
0x110c   :  { %v1892_v46 = vpop.eup %1891 }
0x110d   :  { %v581_v47 = vadd.f32 1.0, %v1892_v46 }
0x110f   :  { %1893 = vrcp.f32 %v581_v47 }
0x1119   :  { %v1894_v11 = vpop.eup %1893 }
0x1172   :  { %v588_v48 = vpop.permute.xlu1 %587 }
0x1173   :  { %v590_v49 = vmul.f32 %v1894_v11, %v588_v48 }
0x1175   :  { %592 = vrot.lane.b32.xlu0 %v590_v49, %s2036_s0 }
0x11e7   :  { %v593_v50 = vpop.permute.xlu0 %592 }
0x11e8   :  { %v595_v51 = vadd.f32 %v593_v50, %v2125_v20 }
0x11ea   :  { %1895 = vtanh.f32 %v595_v51 }
0x11f4   :  { %v1896_v52 = vpop.eup %1895 }
0x11f5   :  { %v598_v53 = vrot.slane %v1896_v52, 2 }
0x11f7   :  { %v600_v54 = vsub.f32 %v2216_v33, %v598_v53 }
0x11f9   :  { %v602_v55 = vrot.slane %v600_v54, 6  ;;  %v799_v54 = vld [vmem:[#allocation5 + $0x20] sm:$0xff] }
0x11fb   :  { %603 = vrot.lane.b32.xlu1 %v602_v55, %s2037_s17  ;;  %v800_v55 = vld [vmem:[#allocation5 + $0x28] sm:$0xff] }
0x126d   :  { %v604_v56 = vpop.permute.xlu1 %603 }
0x126e   :  { %v606_v57 = vmul.f32 %v1894_v11, %v604_v56  ;;  %v801_v56 = vld [vmem:[#allocation5 + $0x30] sm:$0xff] }
0x1270   :  { %608 = vrot.lane.b32.xlu0 %v606_v57, %s2038_s18  ;;  %v2267_v57 = vpack.c.bf16 %v800_v55, %v799_v54 }
0x12e2   :  { %v609_v58 = vpop.permute.xlu0 %608 }
0x12e3   :  { %v2236_v59 = vadd.f32 %v1896_v52, %v609_v58  ;;  %v802_v58 = vld [vmem:[#allocation5 + $0x38] sm:$0xff] }
0x12e5   :  { %v612_v60 = vpack.c.bf16 %v2236_v59, %v2236_v59 }
0x12e7   :  { %v614_v61 = vrot.slane %v612_v60, 1  ;;  %v793_v60 = vld [vmem:[#allocation5] sm:$0xff] }
0x12e9   :  { %615 = vrot.lane.b32.xlu1 %v614_v61, %s2036_s0  ;;  %v794_v61 = vld [vmem:[#allocation5 + $0x8] sm:$0xff] }
0x135b   :  { %v616_v62 = vpop.permute.xlu1 %615 }
0x135c   :  { %1759 = vmatmul.mubr.msk.bf16.vlgmr.msra.gmra.mrb[12].mxu1 %vm110_vm2, %v616_v62  ;;  %v797_v62 = vpack.c.bf16 %v794_v61, %v793_v60 }
0x135d   :  { %1774 = vmatprep.mubr.msk.bf16.mxu1 %vm2034_vm0, %v2033_v0 }
0x135e   :  { %1771 = vmatpush3.bf16.msra.mxu1 %v797_v62 }
0x135f   :  { %1772 = vmatprep.subr.bf16.mxu1 %v2033_v0 }
0x142f   :  { %v654_v63 = vpop.f32.mrb[12].mxu1 }
0x1430   :  { %v670_v1 = vadd.f32 %v2123_v15, %v654_v63  ;;  %v1760_v3 = vpop.f32.mrb[13].mxu1  ;;  %v661_v8 = vrot.slane %v654_v63, 4  ;;  %v795_v63 = vld [vmem:[#allocation5 + $0x10] sm:$0xff] }
0x1431   :  { %v657_v6 = vpop.f32.mrb[14].mxu1 }
0x1432   :  { %v672_v26 = vrot.slane %v670_v1, 4  ;;  %v1761_v7 = vpop.f32.mrb[15].mxu1  ;;  %v663_v9 = vadd.f32 %v661_v8, %v2125_v20  ;;  %v796_v1 = vld [vmem:[#allocation5 + $0x18] sm:$0xff]  ;;  %v785_v8 = vsel %vm784_vm3, %v2136_v41, %v2156_v5 }
0x1433   :  { %v798_v3 = vpack.c.bf16 %v796_v1, %v795_v63 }
0x1434   :  { %673 = vrot.lane.b32.xlu0 %v672_v26, %s2036_s0  ;;  %v1621_v10 = vmul.f32 -1.442695, %v663_v9 }
0x1435   :  { %1773 = vmatpush3.bf16.msra.mxu1 %v798_v3 }
0x1436   :  { %1897 = vpow2.f32 %v1621_v10  ;;  %1786 = vmatprep.subr.bf16.mxu1 %v2033_v0  ;;  %v787_v10 = vsel %vm786_vm4, %v785_v8, %v2176_v37  ;;  %v1624_v37 = vld [vmem:[#allocation5 + $0x40] ss:$0 sm:$0xff] }
0x1440   :  { %v1898_v12 = vpop.eup %1897 }
0x1441   :  { %v667_v14 = vadd.f32 1.0, %v1898_v12 }
0x1443   :  { %1899 = vrcp.f32 %v667_v14  ;;  %v789_v14 = vsel %vm788_vm5, %v787_v10, %v2196_v2 }
0x144d   :  { %v1900_v16 = vpop.eup %1899 }
0x14a6   :  { %v674_v17 = vpop.permute.xlu0 %673 }
0x14a7   :  { %v676_v18 = vmul.f32 %v1900_v16, %v674_v17 }
0x14a9   :  { %678 = vrot.lane.b32.xlu1 %v676_v18, %s2036_s0  ;;  %v2293_v18 = vld [vmem:[#allocation5 + $0x41] ss:$0 sm:$0xff] }
0x151b   :  { %v679_v19 = vpop.permute.xlu1 %678 }
0x151c   :  { %v681_v21 = vadd.f32 %v679_v19, %v2125_v20 }
0x151e   :  { %1901 = vtanh.f32 %v681_v21 }
0x1528   :  { %v1902_v22 = vpop.eup %1901 }
0x1529   :  { %v684_v23 = vrot.slane %v1902_v22, 2 }
0x152b   :  { %v686_v24 = vsub.f32 %v2236_v59, %v684_v23 }
0x152d   :  { %v688_v25 = vrot.slane %v686_v24, 6 }
0x152f   :  { %689 = vrot.lane.b32.xlu0 %v688_v25, %s2037_s17 }
0x15a1   :  { %v690_v27 = vpop.permute.xlu0 %689 }
0x15a2   :  { %v692_v28 = vmul.f32 %v1900_v16, %v690_v27 }
0x15a4   :  { %694 = vrot.lane.b32.xlu1 %v692_v28, %s2038_s18 }
0x1616   :  { %v695_v29 = vpop.permute.xlu1 %694 }
0x1617   :  { %v2252_v30 = vadd.f32 %v1902_v22, %v695_v29 }
0x1619   :  { %v698_v31 = vpack.c.bf16 %v2252_v30, %v2252_v30 }
0x161b   :  { %v700_v32 = vrot.slane %v698_v31, 2 }
0x161d   :  { %701 = vrot.lane.b32.xlu0 %v700_v32, %s2036_s0 }
0x168f   :  { %v702_v34 = vpop.permute.xlu0 %701 }
0x1690   :  { %1767 = vmatmul.mubr.msk.bf16.vlgmr.msra.gmra.mrb[16].mxu0 %vm110_vm2, %v702_v34 }
0x1691   :  { %1782 = vmatprep.mubr.msk.bf16.mxu0 %vm2034_vm0, %v2033_v0  ;;  %1779 = vmatpush3.bf16.msra.mxu0 %v2267_v57 }
0x1692   :  { %1780 = vmatprep.subr.bf16.mxu0 %v2033_v0 }
0x1763   :  { %v740_v35 = vpop.f32.mrb[16].mxu0 }
0x1764   :  { %v756_v36 = vadd.f32 %v2123_v15, %v740_v35  ;;  %v1768_v38 = vpop.f32.mrb[17].mxu0  ;;  %v747_v43 = vrot.slane %v740_v35, 2 }
0x1765   :  { %v743_v39 = vpop.f32.mrb[18].mxu0 }
0x1766   :  { %v758_v40 = vrot.slane %v756_v36, 2  ;;  %v1769_v42 = vpop.f32.mrb[19].mxu0  ;;  %v749_v44 = vadd.f32 %v747_v43, %v2125_v20 }
0x1768   :  { %759 = vrot.lane.b32.xlu1 %v758_v40, %s2036_s0  ;;  %v1623_v4 = vmul.f32 -1.442695, %v749_v44 }
0x176a   :  { %1903 = vpow2.f32 %v1623_v4 }
0x1774   :  { %v1904_v45 = vpop.eup %1903 }
0x1775   :  { %v753_v46 = vadd.f32 1.0, %v1904_v45 }
0x1777   :  { %1905 = vrcp.f32 %v753_v46 }
0x1781   :  { %v1906_v47 = vpop.eup %1905 }
0x17da   :  { %v760_v11 = vpop.permute.xlu1 %759 }
0x17db   :  { %v762_v48 = vmul.f32 %v1906_v47, %v760_v11 }
0x17dd   :  { %764 = vrot.lane.b32.xlu0 %v762_v48, %s2036_s0 }
0x184f   :  { %v765_v15 = vpop.permute.xlu0 %764 }
0x1850   :  { %v767_v49 = vadd.f32 %v765_v15, %v2125_v20  ;;  %v2270_v20 = vpack.c.bf16 %v802_v58, %v801_v56 }
0x1852   :  { %1907 = vtanh.f32 %v767_v49  ;;  %1781 = vmatpush3.bf16.msra.mxu0 %v2270_v20 }
0x1853   :  { %1794 = vmatprep.subr.bf16.mxu0 %v2033_v0 }
0x1855   :  { %1783 = vmatmul.mubr.bf16.vlgmr.msra.gmra.mrb[20].mxu0 %v2035_v13  ;;  %v790_v13 = vsel %vm784_vm3, %v2216_v33, %v2236_v59 }
0x1856   :  { %1795 = vmatpush3.bf16.msra.mxu0 %v2267_v57  ;;  %1798 = vmatprep.mubr.msk.bf16.mxu0 %vm2034_vm0, %v2033_v0  ;;  %v791_v12 = vsel %vm786_vm4, %v790_v13, %v2252_v30 }
0x1857   :  { %1796 = vmatprep.subr.bf16.mxu0 %v2033_v0 }
0x185a   :  { %1797 = vmatpush3.bf16.msra.mxu0 %v2270_v20 }
0x185b   :  { %1810 = vmatprep.subr.bf16.mxu0 %v2033_v0 }
0x185c   :  { %v1908_v50 = vpop.eup %1907 }
0x185d   :  { %v770_v51 = vrot.slane %v1908_v50, 2 }
0x185f   :  { %v772_v52 = vsub.f32 %v2252_v30, %v770_v51 }
0x1861   :  { %v774_v53 = vrot.slane %v772_v52, 6 }
0x1863   :  { %775 = vrot.lane.b32.xlu1 %v774_v53, %s2037_s17 }
0x18d5   :  { %v776_v6 = vpop.permute.xlu1 %775 }
0x18d6   :  { %v778_v26 = vmul.f32 %v1906_v47, %v776_v6 }
0x18d8   :  { %780 = vrot.lane.b32.xlu0 %v778_v26, %s2038_s18 }
0x1928   :  { %v893_v19 = vpop.f32.mrb[20].mxu0 }
0x1929   :  { %v910_v21 = vadd.f32 %v2293_v18, %v893_v19  ;;  %v1784_v41 = vpop.f32.mrb[21].mxu0 }
0x192a   :  { %v896_v5 = vpop.f32.mrb[22].mxu0 }
0x192b   :  { %v1785_v22 = vpop.f32.mrb[23].mxu0  ;;  %912 = vrot.lane.b32.xlu0 %v910_v21, %s2036_s0 }
0x194a   :  { %v781_v7 = vpop.permute.xlu0 %780 }
0x194b   :  { %v783_v9 = vadd.f32 %v1908_v50, %v781_v7 }
0x194d   :  { %v792_v16 = vsel %vm788_vm5, %v791_v12, %v783_v9 }
0x194e   :  { %v807_v17 = vpack.c.bf16 %v792_v16, %v789_v14 }
0x1950   :  { %813 = vrot.lane.b32.xlu1 %v807_v17, %s2036_s0 }
0x199d   :  { %v913_v32 = vpop.permute.xlu0 %912 }
0x19c2   :  { %v814_v33 = vpop.permute.xlu1 %813 }
0x19c3   :  { %1775 = vmatmul.mubr.msk.bf16.vlgmr.msra.gmra.mrb[16].mxu1 %vm110_vm2, %v814_v33 }
0x19c4   :  { %1787 = vmatpush3.bf16.msra.mxu1 %v2267_v57  ;;  %1790 = vmatprep.mubr.msk.bf16.mxu1 %vm2034_vm0, %v2033_v0 }
0x19c5   :  { %1788 = vmatprep.subr.bf16.mxu1 %v2033_v0 }
0x19c8   :  { %1789 = vmatpush3.bf16.msra.mxu1 %v2270_v20 }
0x19c9   :  { %1802 = vmatprep.subr.bf16.mxu1 %v2033_v0 }
0x1a96   :  { %v852_v2 = vpop.f32.mrb[16].mxu1 }
0x1a97   :  { %v2304_v59 = vadd.f32 %v1624_v37, %v852_v2  ;;  %v1776_v23 = vpop.f32.mrb[17].mxu1 }
0x1a98   :  { %v855_v24 = vpop.f32.mrb[18].mxu1 }
0x1a99   :  { %v2306_v25 = vadd.f32 %v1624_v37, %v855_v24  ;;  %v1777_v27 = vpop.f32.mrb[19].mxu1  ;;  %v899_v28 = vadd.f32 %v893_v19, %v2304_v59 }
0x1a9b   :  { %v1626_v29 = vmul.f32 -1.442695, %v899_v28 }
0x1a9d   :  { %1909 = vpow2.f32 %v1626_v29 }
0x1aa7   :  { %v1910_v30 = vpop.eup %1909 }
0x1aa8   :  { %v903_v31 = vadd.f32 1.0, %v1910_v30 }
0x1aaa   :  { %1911 = vrcp.f32 %v903_v31 }
0x1ab4   :  { %v1912_v34 = vpop.eup %1911 }
0x1ab5   :  { %v915_v35 = vmul.f32 %v1912_v34, %v913_v32 }
0x1ab7   :  { %917 = vrot.lane.b32.xlu1 %v915_v35, %s2036_s0 }
0x1b29   :  { %v918_v36 = vpop.permute.xlu1 %917 }
0x1b2a   :  { %v920_v38 = vadd.f32 %v918_v36, %v2304_v59 }
0x1b2c   :  { %1913 = vtanh.f32 %v920_v38 }
0x1b36   :  { %v1914_v39 = vpop.eup %1913 }
0x1b37   :  { %v922_v40 = vsub.f32 0.0, %v1914_v39 }
0x1b39   :  { %924 = vrot.lane.b32.xlu0 %v922_v40, %s2037_s17 }
0x1bab   :  { %v925_v42 = vpop.permute.xlu0 %924 }
0x1bac   :  { %v927_v43 = vmul.f32 %v1912_v34, %v925_v42 }
0x1bae   :  { %929 = vrot.lane.b32.xlu1 %v927_v43, %s2038_s18 }
0x1c20   :  { %v930_v44 = vpop.permute.xlu1 %929 }
0x1c21   :  { %v932_v4 = vadd.f32 %v1914_v39, %v930_v44 }
0x1c23   :  { %v933_v45 = vpack.c.bf16 %v932_v4, %v932_v4 }
0x1c25   :  { %935 = vrot.lane.b32.xlu0 %v933_v45, %s2036_s0 }
0x1c97   :  { %v936_v46 = vpop.permute.xlu0 %935 }
0x1c98   :  { %1791 = vmatmul.mubr.msk.bf16.vlgmr.msra.gmra.mrb[20].mxu1 %vm110_vm2, %v936_v46 }
0x1c99   :  { %1803 = vmatpush3.bf16.msra.mxu1 %v2267_v57  ;;  %1806 = vmatprep.mubr.msk.bf16.mxu1 %vm2034_vm0, %v2033_v0 }
0x1c9a   :  { %1804 = vmatprep.subr.bf16.mxu1 %v2033_v0 }
0x1c9d   :  { %1805 = vmatpush3.bf16.msra.mxu1 %v2270_v20 }
0x1c9e   :  { %1818 = vmatprep.subr.bf16.mxu1 %v2033_v0 }
0x1d6b   :  { %v974_v47 = vpop.f32.mrb[20].mxu1 }
0x1d6c   :  { %v990_v11 = vadd.f32 %v2293_v18, %v974_v47  ;;  %v1792_v48 = vpop.f32.mrb[21].mxu1  ;;  %v981_v51 = vrot.slane %v974_v47, 6 }
0x1d6d   :  { %v977_v15 = vpop.f32.mrb[22].mxu1 }
0x1d6e   :  { %v992_v49 = vrot.slane %v990_v11, 6  ;;  %v1793_v50 = vpop.f32.mrb[23].mxu1  ;;  %v983_v52 = vadd.f32 %v981_v51, %v2304_v59 }
0x1d70   :  { %993 = vrot.lane.b32.xlu1 %v992_v49, %s2036_s0  ;;  %v1629_v53 = vmul.f32 -1.442695, %v983_v52 }
0x1d72   :  { %1915 = vpow2.f32 %v1629_v53 }
0x1d7c   :  { %v1916_v54 = vpop.eup %1915 }
0x1d7d   :  { %v987_v55 = vadd.f32 1.0, %v1916_v54 }
0x1d7f   :  { %1917 = vrcp.f32 %v987_v55 }
0x1d89   :  { %v1918_v56 = vpop.eup %1917 }
0x1de2   :  { %v994_v58 = vpop.permute.xlu1 %993 }
0x1de3   :  { %v996_v60 = vmul.f32 %v1918_v56, %v994_v58 }
0x1de5   :  { %998 = vrot.lane.b32.xlu0 %v996_v60, %s2036_s0 }
0x1e57   :  { %v999_v61 = vpop.permute.xlu0 %998 }
0x1e58   :  { %v1001_v62 = vadd.f32 %v999_v61, %v2304_v59 }
0x1e5a   :  { %1919 = vtanh.f32 %v1001_v62 }
0x1e64   :  { %v1920_v63 = vpop.eup %1919 }
0x1e65   :  { %v1004_v1 = vrot.slane %v1920_v63, 2 }
0x1e67   :  { %v1006_v3 = vsub.f32 %v932_v4, %v1004_v1 }
0x1e69   :  { %v1008_v6 = vrot.slane %v1006_v3, 6 }
0x1e6b   :  { %1009 = vrot.lane.b32.xlu1 %v1008_v6, %s2037_s17 }
0x1edd   :  { %v1010_v26 = vpop.permute.xlu1 %1009 }
0x1ede   :  { %v1012_v7 = vmul.f32 %v1918_v56, %v1010_v26 }
0x1ee0   :  { %1014 = vrot.lane.b32.xlu0 %v1012_v7, %s2038_s18 }
0x1f52   :  { %v1015_v8 = vpop.permute.xlu0 %1014 }
0x1f53   :  { %v1017_v13 = vadd.f32 %v1920_v63, %v1015_v8 }
0x1f55   :  { %v1018_v9 = vpack.c.bf16 %v1017_v13, %v1017_v13 }
0x1f57   :  { %v1020_v10 = vrot.slane %v1018_v9, 1 }
0x1f59   :  { %1021 = vrot.lane.b32.xlu1 %v1020_v10, %s2036_s0 }
0x1fcb   :  { %v1022_v12 = vpop.permute.xlu1 %1021 }
0x1fcc   :  { %1799 = vmatmul.mubr.msk.bf16.vlgmr.msra.gmra.mrb[24].mxu0 %vm110_vm2, %v1022_v12 }
0x1fcd   :  { %1811 = vmatpush3.bf16.msra.mxu0 %v2267_v57  ;;  %1814 = vmatprep.mubr.msk.bf16.mxu0 %vm2034_vm0, %v2033_v0 }
0x1fce   :  { %1812 = vmatprep.subr.bf16.mxu0 %v2033_v0 }
0x1fd1   :  { %1813 = vmatpush3.bf16.msra.mxu0 %v2270_v20 }
0x1fd2   :  { %1826 = vmatprep.subr.bf16.mxu0 %v2033_v0 }
0x209f   :  { %v1060_v14 = vpop.f32.mrb[24].mxu0 }
0x20a0   :  { %v1076_v16 = vadd.f32 %v2293_v18, %v1060_v14  ;;  %v1800_v17 = vpop.f32.mrb[25].mxu0  ;;  %v1067_v5 = vrot.slane %v1060_v14, 4 }
0x20a1   :  { %v1063_v19 = vpop.f32.mrb[26].mxu0 }
0x20a2   :  { %v1078_v21 = vrot.slane %v1076_v16, 4  ;;  %v1801_v41 = vpop.f32.mrb[27].mxu0  ;;  %v1069_v22 = vadd.f32 %v1067_v5, %v2304_v59 }
0x20a4   :  { %1079 = vrot.lane.b32.xlu0 %v1078_v21, %s2036_s0  ;;  %v1631_v33 = vmul.f32 -1.442695, %v1069_v22 }
0x20a6   :  { %1921 = vpow2.f32 %v1631_v33 }
0x20b0   :  { %v1922_v37 = vpop.eup %1921 }
0x20b1   :  { %v1073_v2 = vadd.f32 1.0, %v1922_v37 }
0x20b3   :  { %1923 = vrcp.f32 %v1073_v2 }
0x20bd   :  { %v1924_v23 = vpop.eup %1923 }
0x2116   :  { %v1080_v24 = vpop.permute.xlu0 %1079 }
0x2117   :  { %v1082_v27 = vmul.f32 %v1924_v23, %v1080_v24 }
0x2119   :  { %1084 = vrot.lane.b32.xlu1 %v1082_v27, %s2036_s0 }
0x218b   :  { %v1085_v28 = vpop.permute.xlu1 %1084 }
0x218c   :  { %v1087_v29 = vadd.f32 %v1085_v28, %v2304_v59 }
0x218e   :  { %1925 = vtanh.f32 %v1087_v29 }
0x2198   :  { %v1926_v30 = vpop.eup %1925 }
0x2199   :  { %v1090_v31 = vrot.slane %v1926_v30, 2 }
0x219b   :  { %v1092_v32 = vsub.f32 %v1017_v13, %v1090_v31 }
0x219d   :  { %v1094_v34 = vrot.slane %v1092_v32, 6 }
0x219f   :  { %1095 = vrot.lane.b32.xlu0 %v1094_v34, %s2037_s17 }
0x2211   :  { %v1096_v35 = vpop.permute.xlu0 %1095 }
0x2212   :  { %v1098_v36 = vmul.f32 %v1924_v23, %v1096_v35 }
0x2214   :  { %1100 = vrot.lane.b32.xlu1 %v1098_v36, %s2038_s18 }
0x2286   :  { %v1101_v38 = vpop.permute.xlu1 %1100 }
0x2287   :  { %v1103_v39 = vadd.f32 %v1926_v30, %v1101_v38 }
0x2289   :  { %v1104_v40 = vpack.c.bf16 %v1103_v39, %v1103_v39 }
0x228b   :  { %v1106_v42 = vrot.slane %v1104_v40, 2 }
0x228d   :  { %1107 = vrot.lane.b32.xlu0 %v1106_v42, %s2036_s0 }
0x22ff   :  { %v1108_v43 = vpop.permute.xlu0 %1107 }
0x2300   :  { %1807 = vmatmul.mubr.msk.bf16.vlgmr.msra.gmra.mrb[24].mxu1 %vm110_vm2, %v1108_v43 }
0x2301   :  { %1819 = vmatpush3.bf16.msra.mxu1 %v2267_v57  ;;  %1822 = vmatprep.mubr.msk.bf16.mxu1 %vm2034_vm0, %v2033_v0 }
0x2302   :  { %1820 = vmatprep.subr.bf16.mxu1 %v2033_v0 }
0x2305   :  { %1821 = vmatpush3.bf16.msra.mxu1 %v2270_v20 }
0x2306   :  { %1834 = vmatprep.subr.bf16.mxu1 %v2033_v0 }
0x23d3   :  { %v1146_v44 = vpop.f32.mrb[24].mxu1 }
0x23d4   :  { %v1162_v4 = vadd.f32 %v2293_v18, %v1146_v44  ;;  %v1808_v45 = vpop.f32.mrb[25].mxu1  ;;  %v1153_v48 = vrot.slane %v1146_v44, 2 }
0x23d5   :  { %v1149_v46 = vpop.f32.mrb[26].mxu1 }
0x23d6   :  { %v1164_v47 = vrot.slane %v1162_v4, 2  ;;  %v1809_v11 = vpop.f32.mrb[27].mxu1  ;;  %v1155_v15 = vadd.f32 %v1153_v48, %v2304_v59 }
0x23d8   :  { %1165 = vrot.lane.b32.xlu1 %v1164_v47, %s2036_s0  ;;  %v1633_v49 = vmul.f32 -1.442695, %v1155_v15 }
0x23da   :  { %1927 = vpow2.f32 %v1633_v49 }
0x23e4   :  { %v1928_v50 = vpop.eup %1927 }
0x23e5   :  { %v1159_v51 = vadd.f32 1.0, %v1928_v50 }
0x23e7   :  { %1929 = vrcp.f32 %v1159_v51 }
0x23f1   :  { %v1930_v52 = vpop.eup %1929 }
0x244a   :  { %v1166_v53 = vpop.permute.xlu1 %1165 }
0x244b   :  { %v1168_v54 = vmul.f32 %v1930_v52, %v1166_v53 }
0x244d   :  { %1170 = vrot.lane.b32.xlu0 %v1168_v54, %s2036_s0 }
0x24bf   :  { %v1171_v55 = vpop.permute.xlu0 %1170 }
0x24c0   :  { %v1173_v56 = vadd.f32 %v1171_v55, %v2304_v59 }
0x24c2   :  { %1931 = vtanh.f32 %v1173_v56 }
0x24cc   :  { %v1932_v58 = vpop.eup %1931 }
0x24cd   :  { %v1176_v60 = vrot.slane %v1932_v58, 2 }
0x24cf   :  { %v1178_v61 = vsub.f32 %v1103_v39, %v1176_v60 }
0x24d1   :  { %v1180_v62 = vrot.slane %v1178_v61, 6 }
0x24d3   :  { %1181 = vrot.lane.b32.xlu1 %v1180_v62, %s2037_s17 }
0x2545   :  { %v1182_v63 = vpop.permute.xlu1 %1181 }
0x2546   :  { %v1184_v1 = vmul.f32 %v1930_v52, %v1182_v63 }
0x2548   :  { %1186 = vrot.lane.b32.xlu0 %v1184_v1, %s2038_s18 }
0x25ba   :  { %v1187_v3 = vpop.permute.xlu0 %1186 }
0x25bb   :  { %v1189_v6 = vadd.f32 %v1932_v58, %v1187_v3 }
0x25bd   :  { %v1190_v26 = vpack.c.bf16 %v1189_v6, %v1189_v6 }
0x25bf   :  { %v1192_v7 = vrot.slane %v1190_v26, 3 }
0x25c1   :  { %1193 = vrot.lane.b32.xlu1 %v1192_v7, %s2036_s0 }
0x2633   :  { %v1194_v8 = vpop.permute.xlu1 %1193 }
0x2634   :  { %1815 = vmatmul.mubr.msk.bf16.vlgmr.msra.gmra.mrb[28].mxu0 %vm110_vm2, %v1194_v8 }
0x2635   :  { %1827 = vmatpush3.bf16.msra.mxu0 %v2267_v57  ;;  %1830 = vmatprep.mubr.msk.bf16.mxu0 %vm2034_vm0, %v2033_v0 }
0x2636   :  { %1828 = vmatprep.subr.bf16.mxu0 %v2033_v0 }
0x2639   :  { %1829 = vmatpush3.bf16.msra.mxu0 %v2270_v20 }
0x263a   :  { %1842 = vmatprep.subr.bf16.mxu0 %v2033_v0 }
0x2707   :  { %v1232_v59 = vpop.f32.mrb[28].mxu0 }
0x2708   :  { %v1245_v13 = vadd.f32 %v2293_v18, %v1232_v59  ;;  %v1816_v9 = vpop.f32.mrb[29].mxu0  ;;  %v1238_v14 = vadd.f32 %v1232_v59, %v2306_v25 }
0x2709   :  { %v1235_v10 = vpop.f32.mrb[30].mxu0 }
0x270a   :  { %1247 = vrot.lane.b32.xlu0 %v1245_v13, %s2036_s0  ;;  %v1817_v12 = vpop.f32.mrb[31].mxu0  ;;  %v1635_v16 = vmul.f32 -1.442695, %v1238_v14 }
0x270c   :  { %1933 = vpow2.f32 %v1635_v16 }
0x2716   :  { %v1934_v17 = vpop.eup %1933 }
0x2717   :  { %v1242_v19 = vadd.f32 1.0, %v1934_v17 }
0x2719   :  { %1935 = vrcp.f32 %v1242_v19 }
0x2723   :  { %v1936_v21 = vpop.eup %1935 }
0x277c   :  { %v1248_v41 = vpop.permute.xlu0 %1247 }
0x277d   :  { %v1250_v5 = vmul.f32 %v1936_v21, %v1248_v41 }
0x277f   :  { %1252 = vrot.lane.b32.xlu1 %v1250_v5, %s2036_s0 }
0x27f1   :  { %v1253_v22 = vpop.permute.xlu1 %1252 }
0x27f2   :  { %v1255_v33 = vadd.f32 %v1253_v22, %v2306_v25 }
0x27f4   :  { %1937 = vtanh.f32 %v1255_v33 }
0x27fe   :  { %v1938_v37 = vpop.eup %1937 }
0x27ff   :  { %v1258_v2 = vrot.slane %v1938_v37, 2 }
0x2801   :  { %v1260_v23 = vsub.f32 %v1189_v6, %v1258_v2 }
0x2803   :  { %v1262_v24 = vrot.slane %v1260_v23, 6 }
0x2805   :  { %1263 = vrot.lane.b32.xlu0 %v1262_v24, %s2037_s17 }
0x2877   :  { %v1264_v27 = vpop.permute.xlu0 %1263 }
0x2878   :  { %v1266_v28 = vmul.f32 %v1936_v21, %v1264_v27 }
0x287a   :  { %1268 = vrot.lane.b32.xlu1 %v1266_v28, %s2038_s18 }
0x28ec   :  { %v1269_v29 = vpop.permute.xlu1 %1268 }
0x28ed   :  { %v1271_v30 = vadd.f32 %v1938_v37, %v1269_v29 }
0x28ef   :  { %v1272_v31 = vpack.c.bf16 %v1271_v30, %v1271_v30 }
0x28f1   :  { %1274 = vrot.lane.b32.xlu0 %v1272_v31, %s2036_s0 }
0x2963   :  { %v1275_v32 = vpop.permute.xlu0 %1274 }
0x2964   :  { %1823 = vmatmul.mubr.msk.bf16.vlgmr.msra.gmra.mrb[28].mxu1 %vm110_vm2, %v1275_v32 }
0x2965   :  { %1835 = vmatpush3.bf16.msra.mxu1 %v2267_v57  ;;  %1838 = vmatprep.mubr.msk.bf16.mxu1 %vm2034_vm0, %v2033_v0 }
0x2966   :  { %1836 = vmatprep.subr.bf16.mxu1 %v2033_v0 }
0x2969   :  { %1837 = vmatpush3.bf16.msra.mxu1 %v2270_v20 }
0x2a37   :  { %v1313_v34 = vpop.f32.mrb[28].mxu1 }
0x2a38   :  { %v1329_v35 = vadd.f32 %v2293_v18, %v1313_v34  ;;  %v1824_v36 = vpop.f32.mrb[29].mxu1  ;;  %v1320_v42 = vrot.slane %v1313_v34, 6 }
0x2a39   :  { %v1316_v38 = vpop.f32.mrb[30].mxu1 }
0x2a3a   :  { %v1331_v39 = vrot.slane %v1329_v35, 6  ;;  %v1825_v40 = vpop.f32.mrb[31].mxu1  ;;  %v1322_v43 = vadd.f32 %v1320_v42, %v2306_v25 }
0x2a3c   :  { %1332 = vrot.lane.b32.xlu1 %v1331_v39, %s2036_s0  ;;  %v1637_v57 = vmul.f32 -1.442695, %v1322_v43 }
0x2a3e   :  { %1939 = vpow2.f32 %v1637_v57 }
0x2a48   :  { %v1940_v44 = vpop.eup %1939 }
0x2a49   :  { %v1326_v4 = vadd.f32 1.0, %v1940_v44 }
0x2a4b   :  { %1941 = vrcp.f32 %v1326_v4 }
0x2a55   :  { %v1942_v45 = vpop.eup %1941 }
0x2aae   :  { %v1333_v46 = vpop.permute.xlu1 %1332 }
0x2aaf   :  { %v1335_v20 = vmul.f32 %v1942_v45, %v1333_v46  ;;  %v1529_v46 = vld [vmem:[%s2440_s3] sm:$0xff] }
0x2ab1   :  { %1337 = vrot.lane.b32.xlu0 %v1335_v20, %s2036_s0  ;;  %v1530_v20 = vld [vmem:[%s2440_s3 + $0x8] sm:$0xff] }
0x2b23   :  { %v1338_v47 = vpop.permute.xlu0 %1337 }
0x2b24   :  { %v1340_v11 = vadd.f32 %v1338_v47, %v2306_v25  ;;  %v1531_v47 = vld [vmem:[%s2440_s3 + $0x10] sm:$0xff] }
0x2b26   :  { %1943 = vtanh.f32 %v1340_v11  ;;  %v1532_v11 = vld [vmem:[%s2440_s3 + $0x18] sm:$0xff] }
0x2b30   :  { %v1944_v48 = vpop.eup %1943 }
0x2b31   :  { %v1343_v15 = vrot.slane %v1944_v48, 2 }
0x2b33   :  { %v1345_v49 = vsub.f32 %v1271_v30, %v1343_v15 }
0x2b35   :  { %v1347_v50 = vrot.slane %v1345_v49, 6 }
0x2b37   :  { %1348 = vrot.lane.b32.xlu1 %v1347_v50, %s2037_s17 }
0x2ba9   :  { %v1349_v51 = vpop.permute.xlu1 %1348 }
0x2baa   :  { %v1351_v52 = vmul.f32 %v1942_v45, %v1349_v51 }
0x2bac   :  { %1353 = vrot.lane.b32.xlu0 %v1351_v52, %s2038_s18 }
0x2c1e   :  { %v1354_v53 = vpop.permute.xlu0 %1353 }
0x2c1f   :  { %v1356_v54 = vadd.f32 %v1944_v48, %v1354_v53  ;;  %v1534_v48 = vpack.c.bf16 %v1532_v11, %v1531_v47 }
0x2c21   :  { %v1357_v55 = vpack.c.bf16 %v1356_v54, %v1356_v54 }
0x2c23   :  { %v1359_v56 = vrot.slane %v1357_v55, 1  ;;  %v1642_v55 = vld [vmem:[%s2440_s3 + $0x20] ss:$0 sm:$0xff] }
0x2c25   :  { %1360 = vrot.lane.b32.xlu1 %v1359_v56, %s2036_s0 }
0x2c97   :  { %v1361_v58 = vpop.permute.xlu1 %1360 }
0x2c98   :  { %1831 = vmatmul.mubr.msk.bf16.vlgmr.msra.gmra.mrb[32].mxu0 %vm110_vm2, %v1361_v58 }
0x2c99   :  { %1846 = vmatprep.mubr.msk.bf16.mxu0 %vm2034_vm0, %v2033_v0 }
0x2d6b   :  { %v1399_v60 = vpop.f32.mrb[32].mxu0 }
0x2d6c   :  { %v1415_v61 = vadd.f32 %v2293_v18, %v1399_v60  ;;  %v1832_v62 = vpop.f32.mrb[33].mxu0  ;;  %v1406_v6 = vrot.slane %v1399_v60, 4 }
0x2d6d   :  { %v1402_v63 = vpop.f32.mrb[34].mxu0 }
0x2d6e   :  { %v1417_v1 = vrot.slane %v1415_v61, 4  ;;  %v1833_v3 = vpop.f32.mrb[35].mxu0  ;;  %v1408_v26 = vadd.f32 %v1406_v6, %v2306_v25 }
0x2d70   :  { %1418 = vrot.lane.b32.xlu0 %v1417_v1, %s2036_s0  ;;  %v1639_v7 = vmul.f32 -1.442695, %v1408_v26 }
0x2d72   :  { %1945 = vpow2.f32 %v1639_v7 }
0x2d7c   :  { %v1946_v8 = vpop.eup %1945 }
0x2d7d   :  { %v1412_v59 = vadd.f32 1.0, %v1946_v8 }
0x2d7f   :  { %1947 = vrcp.f32 %v1412_v59 }
0x2d89   :  { %v1948_v13 = vpop.eup %1947 }
0x2de2   :  { %v1419_v9 = vpop.permute.xlu0 %1418 }
0x2de3   :  { %v1421_v10 = vmul.f32 %v1948_v13, %v1419_v9 }
0x2de5   :  { %1423 = vrot.lane.b32.xlu1 %v1421_v10, %s2036_s0 }
0x2e57   :  { %v1424_v12 = vpop.permute.xlu1 %1423 }
0x2e58   :  { %v1426_v14 = vadd.f32 %v1424_v12, %v2306_v25 }
0x2e5a   :  { %1949 = vtanh.f32 %v1426_v14 }
0x2e64   :  { %v1950_v16 = vpop.eup %1949 }
0x2e65   :  { %v1429_v17 = vrot.slane %v1950_v16, 2 }
0x2e67   :  { %v1431_v19 = vsub.f32 %v1356_v54, %v1429_v17 }
0x2e69   :  { %v1433_v21 = vrot.slane %v1431_v19, 6 }
0x2e6b   :  { %1434 = vrot.lane.b32.xlu0 %v1433_v21, %s2037_s17 }
0x2edd   :  { %v1435_v41 = vpop.permute.xlu0 %1434 }
0x2ede   :  { %v1437_v5 = vmul.f32 %v1948_v13, %v1435_v41 }
0x2ee0   :  { %1439 = vrot.lane.b32.xlu1 %v1437_v5, %s2038_s18 }
0x2f52   :  { %v1440_v22 = vpop.permute.xlu1 %1439 }
0x2f53   :  { %v1442_v33 = vadd.f32 %v1950_v16, %v1440_v22 }
0x2f55   :  { %v1443_v37 = vpack.c.bf16 %v1442_v33, %v1442_v33 }
0x2f57   :  { %v1445_v2 = vrot.slane %v1443_v37, 2 }
0x2f59   :  { %1446 = vrot.lane.b32.xlu0 %v1445_v2, %s2036_s0 }
0x2fcb   :  { %v1447_v23 = vpop.permute.xlu0 %1446 }
0x2fcc   :  { %1839 = vmatmul.mubr.msk.bf16.vlgmr.msra.gmra.mrb[32].mxu1 %vm110_vm2, %v1447_v23 }
0x309f   :  { %v1485_v24 = vpop.f32.mrb[32].mxu1 }
0x30a0   :  { %v1501_v27 = vadd.f32 %v2293_v18, %v1485_v24  ;;  %v1840_v28 = vpop.f32.mrb[33].mxu1  ;;  %v1492_v32 = vrot.slane %v1485_v24, 2 }
0x30a1   :  { %v1488_v29 = vpop.f32.mrb[34].mxu1 }
0x30a2   :  { %v1503_v30 = vrot.slane %v1501_v27, 2  ;;  %v1841_v31 = vpop.f32.mrb[35].mxu1  ;;  %v1494_v34 = vadd.f32 %v1492_v32, %v2306_v25 }
0x30a4   :  { %1504 = vrot.lane.b32.xlu1 %v1503_v30, %s2036_s0  ;;  %v1641_v35 = vmul.f32 -1.442695, %v1494_v34 }
0x30a6   :  { %1951 = vpow2.f32 %v1641_v35 }
0x30b0   :  { %v1952_v36 = vpop.eup %1951 }
0x30b1   :  { %v1498_v38 = vadd.f32 1.0, %v1952_v36 }
0x30b3   :  { %1953 = vrcp.f32 %v1498_v38 }
0x30bd   :  { %v1954_v39 = vpop.eup %1953 }
0x3116   :  { %v1505_v40 = vpop.permute.xlu1 %1504 }
0x3117   :  { %v1507_v42 = vmul.f32 %v1954_v39, %v1505_v40 }
0x3119   :  { %1509 = vrot.lane.b32.xlu0 %v1507_v42, %s2036_s0 }
0x318b   :  { %v1510_v18 = vpop.permute.xlu0 %1509 }
0x318c   :  { %v1512_v43 = vadd.f32 %v1510_v18, %v2306_v25  ;;  %v1533_v25 = vpack.c.bf16 %v1530_v20, %v1529_v46 }
0x318e   :  { %1955 = vtanh.f32 %v1512_v43  ;;  %1843 = vmatpush3.bf16.msra.mxu0 %v1533_v25 }
0x318f   :  { %1844 = vmatprep.subr.bf16.mxu0 %v2033_v0 }
0x3192   :  { %1845 = vmatpush3.bf16.msra.mxu0 %v1534_v48 }
0x3198   :  { %v1956_v57 = vpop.eup %1955 }
0x3199   :  { %v1515_v44 = vrot.slane %v1956_v57, 2 }
0x319b   :  { %v1517_v4 = vsub.f32 %v1442_v33, %v1515_v44 }
0x319d   :  { %v1519_v45 = vrot.slane %v1517_v4, 6 }
0x319f   :  { %1520 = vrot.lane.b32.xlu1 %v1519_v45, %s2037_s17 }
0x3211   :  { %v1521_v15 = vpop.permute.xlu1 %1520 }
0x3212   :  { %v1523_v49 = vmul.f32 %v1954_v39, %v1521_v15 }
0x3214   :  { %1525 = vrot.lane.b32.xlu0 %v1523_v49, %s2038_s18 }
0x3286   :  { %v1526_v50 = vpop.permute.xlu0 %1525 }
0x3287   :  { %v1528_v51 = vadd.f32 %v1956_v57, %v1526_v50 }
0x3289   :  { %v1536_v52 = vpack.c.bf16 %v1528_v51, %v1528_v51 }
0x328b   :  { %v1542_v53 = vrot.slane %v1536_v52, 3 }
0x328d   :  { %1543 = vrot.lane.b32.xlu1 %v1542_v53, %s2036_s0 }
0x32ff   :  { %v1544_v54 = vpop.permute.xlu1 %1543 }
0x3300   :  { %1847 = vmatmul.mubr.msk.bf16.vlgmr.msra.gmra.mrb[36].mxu0 %vm110_vm2, %v1544_v54 }
0x33d3   :  { %v1582_v0 = vpop.f32.mrb[36].mxu0 }
0x33d4   :  { %v1583_v56 = vadd.f32 %v1642_v55, %v1582_v0  ;;  %v1848_v58 = vpop.f32.mrb[37].mxu0 }
0x33d5   :  { %v1585_v60 = vpop.f32.mrb[38].mxu0 }
0x33d6   :  { %v1849_v61 = vpop.f32.mrb[39].mxu0  ;;  %1589 = vst.msk [vmem:[#allocation7] sm:$0x3] %vm1588_vm6, %v1583_v56 }
0x33d7   :  { %2012 = shalt.err (!%p2009_p6)
}
0x33d8   :  { %s2013_s3 = scalar_lea.hbm %s2441_s4, 32 }
0x33d9   :  { %p2014_p7 = scmp.ne.s32.totalorder %s2441_s4, %s2013_s3  ;;  %p2017_p8 = scmp.lt.u32.totalorder %s2013_s3, %s2441_s4 }
0x33db   :  { %p2019_p9 = pnand %p2017_p8, %p2014_p7 }
0x33dd   :  { %2022 = shalt.err (!%p2019_p9)
}
0x33de   :  { %1599 = dma.vmem_to_hbm [thread:$0]  %s1597_s30, 32, %s2441_s4, [#allocation4]  }
0x33df   :  { %2027 = dma.done.wait [#allocation4], 32  }
0x33e0   :  { %2028 = vsyncadd [#allocation4], 4294967264 }
0x33e1   :  { %1603 = vsyncpa [#allocation3], 1 }
0x33e2   :  { %1604 = vsyncpa [#allocation6], 1 }
0x33e3   :  { %1605 = vsyncpa [#allocation4], 1 }

</bundles_post_ra>
